<compile_context>
chip_gen: v7x
topology: tpu7x:2x2x1
jax: 0.10.0
libtpu: 0.0.40
codegen_flags: <defaults>
</compile_context>

<pallas_src>
import functools
import math

import jax
import jax.numpy as jnp
from jax.experimental import pallas as pl
from jax.experimental.pallas import tpu as pltpu


def _output_size(input_size, kernel_size, stride, padding, dilation):
    return math.floor(
        (input_size + 2 * padding - dilation * (kernel_size - 1) - 1) / stride + 1
    )


def _round_up(n, m):
    return ((n + m - 1) // m) * m


def _tiled_bytes(shape, dtype):
    """VMEM footprint of one buffer in the native (sublane, lane) tiled layout."""
    itemsize = jnp.dtype(dtype).itemsize
    sub = max(8, 32 // itemsize)  # 8 for f32, 16 for bf16, 32 for 1-byte types
    *lead, s, l = shape
    lead_prod = 1
    for d in lead:
        lead_prod *= d
    return lead_prod * _round_up(s, sub) * _round_up(max(l, 1), 128) * itemsize


def _tropical_kernel(x_ref, w_ref, o_ref, *scratch, K, H, W, Hp, Wp, Ho, Wo,
                     stride, padding, dilation, is_max):
    """One grid step: a lane-block of B*C planes in (H, W, lanes) layout.

    x_ref : (H, W, LB)   unpadded input block (original dtype)
    w_ref : (K*K, LB)    effective per-lane tap weights, f32, VMEM
    o_ref : (Ho, Wo, LB) output block (input dtype)
    scratch[0] (only if padding > 0): (Hp, Wp, LB) f32 neutral-padded planes
    """
    KK = K * K
    neutral = -jnp.inf if is_max else jnp.inf

    if padding > 0:
        pad_ref = scratch[0]
        lanes = pad_ref.shape[-1]
        # Only the 4 thin border strips are filled with the neutral value
        # (re-done every step so the kernel stays correct when the grid is
        # sharded across TensorCores and scratch is per-core).
        pad_ref[:padding, :, :] = jnp.full((padding, Wp, lanes), neutral, jnp.float32)
        pad_ref[Hp - padding:, :, :] = jnp.full((padding, Wp, lanes), neutral, jnp.float32)
        pad_ref[padding:padding + H, :padding, :] = jnp.full(
            (H, padding, lanes), neutral, jnp.float32)
        pad_ref[padding:padding + H, Wp - padding:, :] = jnp.full(
            (H, padding, lanes), neutral, jnp.float32)
        # Interior: the current input block (cast on store).
        pad_ref[padding:padding + H, padding:padding + W, :] = (
            x_ref[...].astype(jnp.float32))
        src = pad_ref
    else:
        src = x_ref

    acc = None
    for t in range(KK):
        ki, kj = t // K, t % K
        r0 = ki * dilation
        c0 = kj * dilation
        if stride == 1:
            patch = src[r0:r0 + Ho, c0:c0 + Wo, :]
        else:
            # Strided ref load per tap: keeps vreg pressure low (no whole-plane
            # materialization) and only touches the elements actually used.
            patch = src[pl.ds(r0, Ho, stride=stride),
                        pl.ds(c0, Wo, stride=stride), :]
        v = patch.astype(jnp.float32) + w_ref[t]  # (Ho,Wo,LB) + (LB,) lane bcast
        if acc is None:
            acc = v
        else:
            acc = jnp.maximum(acc, v) if is_max else jnp.minimum(acc, v)

    o_ref[...] = acc.astype(o_ref.dtype)  # single lane-dense store, cast free


def tropical_conv2d(x, kernel, *, is_max, softmax_temp=None, stride=1,
                    padding=0, dilation=1, groups=-1):
    """Matches TropicalConv2D.forward for softmax_temp=None (hard max/min)."""
    assert softmax_temp is None  # TODO(synk): soft tropical reduction path
    assert kernel.ndim == 4, f"kernel.shape={kernel.shape!r}"
    out_channels, kernel_in_ch, K, K2 = kernel.shape
    assert K == K2 and kernel_in_ch == 1

    xdims = x.ndim
    if xdims == 3:
        x = x[None]
    assert x.ndim == 4, f"x.shape={x.shape!r}"
    B, C, H, W = x.shape
    assert C == out_channels
    assert groups == -1 or groups == C
    assert jnp.issubdtype(x.dtype, jnp.floating), "floating inputs only"

    Ho = _output_size(H, K, stride, padding, dilation)
    Wo = _output_size(W, K, stride, padding, dilation)
    assert Ho > 0 and Wo > 0
    Hp, Wp = H + 2 * padding, W + 2 * padding
    KK = K * K
    BC = B * C

    # Effective per-channel tap weights so the kernel body is always
    # "patch + w":  max (dilation) -> spatially flipped kernel, added;
    #               min (erosion)  -> negated kernel, not flipped.
    kern = kernel.astype(jnp.float32)
    w_eff = kern[:, 0, ::-1, ::-1] if is_max else -kern[:, 0, :, :]
    w_kk_c = w_eff.reshape(C, KK).T            # (KK, C)
    w_lanes = jnp.tile(w_kk_c, (1, B))         # (KK, B*C): lane l -> channel l % C

    # Lane-dense layout: batch*channel on lanes, tap shifts on leading/sublane.
    x_t = jnp.transpose(x, (2, 3, 0, 1)).reshape(H, W, BC)

    # ---- generation-aware VMEM budgeting (real tiled footprint) -------------
    try:
        info = pltpu.get_tpu_info()
        vmem_cap = int(getattr(info, "vmem_capacity_bytes", 64 << 20))
    except Exception:
        vmem_cap = 64 << 20  # conservative (v7x-sized) fallback
    budget = (24 << 20) if vmem_cap >= (100 << 20) else (8 << 20)

    def footprint(lanes):
        f = 2 * _tiled_bytes((H, W, lanes), x.dtype)         # double-buffered in
        f += 2 * _tiled_bytes((Ho, Wo, lanes), x.dtype)      # double-buffered out
        f += 2 * _tiled_bytes((KK, lanes), jnp.float32)      # tap-weight table
        if padding > 0:
            f += _tiled_bytes((Hp, Wp, lanes), jnp.float32)  # pad scratch
        return f

    if BC <= 128 or footprint(BC) <= budget:
        LB = BC
        BCp = BC
    else:
        LB = 128
        while LB + 128 < BC and footprint(LB + 128) <= budget:
            LB += 128
        BCp = _round_up(BC, LB)   # handles non-divisor B*C (padded lanes)
    nlb = BCp // LB

    if BCp != BC:
        x_t = jnp.pad(x_t, ((0, 0), (0, 0), (0, BCp - BC)))
        w_lanes = jnp.pad(w_lanes, ((0, 0), (0, BCp - BC)))

    scratch_shapes = []
    if padding > 0:
        scratch_shapes.append(pltpu.VMEM((Hp, Wp, LB), jnp.float32))

    need = footprint(LB)
    vmem_limit = int(min(max(need * 2 + (4 << 20), 32 << 20),
                         vmem_cap - (16 << 20)))

    body = functools.partial(
        _tropical_kernel, K=K, H=H, W=W, Hp=Hp, Wp=Wp, Ho=Ho, Wo=Wo,
        stride=stride, padding=padding, dilation=dilation, is_max=is_max)

    out_t = pl.pallas_call(
        body,
        out_shape=jax.ShapeDtypeStruct((Ho, Wo, BCp), x.dtype),
        grid=(nlb,),
        in_specs=[
            pl.BlockSpec((H, W, LB), lambda i: (0, 0, i)),
            pl.BlockSpec((KK, LB), lambda i: (0, i)),
        ],
        out_specs=pl.BlockSpec((Ho, Wo, LB), lambda i: (0, 0, i)),
        scratch_shapes=scratch_shapes,
        compiler_params=pltpu.CompilerParams(
            dimension_semantics=("parallel",),
            vmem_limit_bytes=vmem_limit),
    )(x_t, w_lanes)

    out = out_t[:, :, :BC].reshape(Ho, Wo, B, C).transpose(2, 3, 0, 1)
    if xdims == 3:
        out = out[0]
    return out


def tropical_conv2d_ref(x, kernel, *, is_max, stride=1, padding=0, dilation=1):
    """Pure-JAX reference mirroring the PyTorch unfold-broadcast semantics."""
    B, C, H, W = x.shape
    _, _, K, _ = kernel.shape
    Ho = _output_size(H, K, stride, padding, dilation)
    Wo = _output_size(W, K, stride, padding, dilation)
    neutral = -jnp.inf if is_max else jnp.inf
    xp = jnp.pad(
        x.astype(jnp.float32),
        ((0, 0), (0, 0), (padding, padding), (padding, padding)),
        constant_values=neutral,
    )
    w = kernel.astype(jnp.float32)[:, 0]
    if is_max:
        w = w[:, ::-1, ::-1]
    acc = jnp.full((B, C, Ho, Wo), neutral, jnp.float32)
    for ki in range(K):
        for kj in range(K):
            patch = xp[
                :, :,
                ki * dilation: ki * dilation + (Ho - 1) * stride + 1: stride,
                kj * dilation: kj * dilation + (Wo - 1) * stride + 1: stride,
            ]
            tap = w[:, ki, kj][None, :, None, None]
            v = patch + tap if is_max else patch - tap
            acc = jnp.maximum(acc, v) if is_max else jnp.minimum(acc, v)
    return acc.astype(x.dtype)


if __name__ == "__main__":
    key = jax.random.PRNGKey(0)
    kx, kw = jax.random.split(key)

    B, C, H, W, K = 2, 4, 16, 16, 3
    x = jax.random.normal(kx, (B, C, H, W), dtype=jnp.float32)
    # Deterministic "parameters": kernel of shape (out_channels, 1, K, K).
    kernel = 0.1 * jax.random.normal(kw, (C, 1, K, K), dtype=jnp.float32)

    out_max = tropical_conv2d(x, kernel, is_max=True, stride=1, padding=1)
    out_min = tropical_conv2d(x, kernel, is_max=False, stride=1, padding=1)
    out_dil = tropical_conv2d(x, kernel, is_max=True, stride=1, padding=0,
                              dilation=2)
    jax.block_until_ready((out_max, out_min, out_dil))

    ref_max = tropical_conv2d_ref(x, kernel, is_max=True, stride=1, padding=1)
    ref_min = tropical_conv2d_ref(x, kernel, is_max=False, stride=1, padding=1)
    ref_dil = tropical_conv2d_ref(x, kernel, is_max=True, stride=1, padding=0,
                                  dilation=2)

    assert out_max.shape == (B, C, H, W)
    assert out_min.shape == (B, C, H, W)
    assert out_dil.shape == (B, C, 12, 12)
    assert jnp.allclose(out_max, ref_max, atol=1e-6), "max (dilation) mismatch"
    assert jnp.allclose(out_min, ref_min, atol=1e-6), "min (erosion) mismatch"
    assert jnp.allclose(out_dil, ref_dil, atol=1e-6), "dilated max mismatch"

    print("KERNEL_OK")
</pallas_src>

<mosaic_0001>
module attributes {stable_mosaic.version = 11 : i64} {
  func.func @_tropical_kernel(%arg0: i32, %arg1: memref<16x16x8xf32, #tpu.memory_space<vmem>>, %arg2: memref<9x8xf32, #tpu.memory_space<vmem>>, %arg3: memref<16x16x8xf32, #tpu.memory_space<vmem>>, %arg4: memref<18x18x8xf32, #tpu.memory_space<vmem>>) attributes {dimension_semantics = [#tpu.dimension_semantics<parallel>], iteration_bounds = array<i64: 1>, scalar_prefetch = 0 : i64, scratch_operands = 1 : i64, tpu.core_type = #tpu.core_type<tc>, window_params = [{transform_indices = @transform_0, window_bounds = array<i64: 16, 16, 8>}, {transform_indices = @transform_1, window_bounds = array<i64: 9, 8>}, {transform_indices = @transform_2, window_bounds = array<i64: 16, 16, 8>}]} {
    %cst = arith.constant 0xFF800000 : f32
    %0 = vector.broadcast %cst : f32 to vector<1x18x8xf32>
    %c0 = arith.constant 0 : index
    %c0_0 = arith.constant 0 : index
    %c0_1 = arith.constant 0 : index
    %1 = vector.load %arg4[%c0, %c0_0, %c0_1] : memref<18x18x8xf32, #tpu.memory_space<vmem>>, vector<1x18x8xf32>
    tpu.vector_store %arg4[%c0, %c0_0, %c0_1], %0 {strides = array<i32>} : memref<18x18x8xf32, #tpu.memory_space<vmem>>, vector<1x18x8xf32>,
    %cst_2 = arith.constant 0xFF800000 : f32
    %2 = vector.broadcast %cst_2 : f32 to vector<1x18x8xf32>
    %c17 = arith.constant 17 : index
    %c0_3 = arith.constant 0 : index
    %c0_4 = arith.constant 0 : index
    %3 = vector.load %arg4[%c17, %c0_3, %c0_4] : memref<18x18x8xf32, #tpu.memory_space<vmem>>, vector<1x18x8xf32>
    tpu.vector_store %arg4[%c17, %c0_3, %c0_4], %2 {strides = array<i32>} : memref<18x18x8xf32, #tpu.memory_space<vmem>>, vector<1x18x8xf32>,
    %cst_5 = arith.constant 0xFF800000 : f32
    %4 = vector.broadcast %cst_5 : f32 to vector<16x1x8xf32>
    %c1 = arith.constant 1 : index
    %c0_6 = arith.constant 0 : index
    %c0_7 = arith.constant 0 : index
    %5 = vector.load %arg4[%c1, %c0_6, %c0_7] : memref<18x18x8xf32, #tpu.memory_space<vmem>>, vector<16x1x8xf32>
    tpu.vector_store %arg4[%c1, %c0_6, %c0_7], %4 {strides = array<i32>} : memref<18x18x8xf32, #tpu.memory_space<vmem>>, vector<16x1x8xf32>,
    %cst_8 = arith.constant 0xFF800000 : f32
    %6 = vector.broadcast %cst_8 : f32 to vector<16x1x8xf32>
    %c1_9 = arith.constant 1 : index
    %c17_10 = arith.constant 17 : index
    %c0_11 = arith.constant 0 : index
    %7 = vector.load %arg4[%c1_9, %c17_10, %c0_11] : memref<18x18x8xf32, #tpu.memory_space<vmem>>, vector<16x1x8xf32>
    tpu.vector_store %arg4[%c1_9, %c17_10, %c0_11], %6 {strides = array<i32>} : memref<18x18x8xf32, #tpu.memory_space<vmem>>, vector<16x1x8xf32>,
    %c0_12 = arith.constant 0 : index
    %c0_13 = arith.constant 0 : index
    %c0_14 = arith.constant 0 : index
    %8 = vector.load %arg1[%c0_12, %c0_13, %c0_14] : memref<16x16x8xf32, #tpu.memory_space<vmem>>, vector<16x16x8xf32>
    %c1_15 = arith.constant 1 : index
    %c1_16 = arith.constant 1 : index
    %c0_17 = arith.constant 0 : index
    %9 = vector.load %arg4[%c1_15, %c1_16, %c0_17] : memref<18x18x8xf32, #tpu.memory_space<vmem>>, vector<16x16x8xf32>
    tpu.vector_store %arg4[%c1_15, %c1_16, %c0_17], %8 {strides = array<i32>} : memref<18x18x8xf32, #tpu.memory_space<vmem>>, vector<16x16x8xf32>,
    %c0_18 = arith.constant 0 : index
    %c0_19 = arith.constant 0 : index
    %c0_20 = arith.constant 0 : index
    %10 = vector.load %arg4[%c0_18, %c0_19, %c0_20] : memref<18x18x8xf32, #tpu.memory_space<vmem>>, vector<16x16x8xf32>
    %c0_21 = arith.constant 0 : index
    %c0_22 = arith.constant 0 : index
    %11 = vector.load %arg2[%c0_21, %c0_22] : memref<9x8xf32, #tpu.memory_space<vmem>>, vector<1x8xf32>
    %12 = vector.shape_cast %11 : vector<1x8xf32> to vector<8xf32>
    %13 = vector.shape_cast %12 : vector<8xf32> to vector<1x1x8xf32>
    %14 = vector.broadcast %13 : vector<1x1x8xf32> to vector<16x16x8xf32>
    %15 = arith.addf %10, %14 : vector<16x16x8xf32>
    %c0_23 = arith.constant 0 : index
    %c1_24 = arith.constant 1 : index
    %c0_25 = arith.constant 0 : index
    %16 = vector.load %arg4[%c0_23, %c1_24, %c0_25] : memref<18x18x8xf32, #tpu.memory_space<vmem>>, vector<16x16x8xf32>
    %c1_26 = arith.constant 1 : index
    %c0_27 = arith.constant 0 : index
    %17 = vector.load %arg2[%c1_26, %c0_27] : memref<9x8xf32, #tpu.memory_space<vmem>>, vector<1x8xf32>
    %18 = vector.shape_cast %17 : vector<1x8xf32> to vector<8xf32>
    %19 = vector.shape_cast %18 : vector<8xf32> to vector<1x1x8xf32>
    %20 = vector.broadcast %19 : vector<1x1x8xf32> to vector<16x16x8xf32>
    %21 = arith.addf %16, %20 : vector<16x16x8xf32>
    %22 = arith.maximumf %15, %21 : vector<16x16x8xf32>
    %c0_28 = arith.constant 0 : index
    %c2 = arith.constant 2 : index
    %c0_29 = arith.constant 0 : index
    %23 = vector.load %arg4[%c0_28, %c2, %c0_29] : memref<18x18x8xf32, #tpu.memory_space<vmem>>, vector<16x16x8xf32>
    %c2_30 = arith.constant 2 : index
    %c0_31 = arith.constant 0 : index
    %24 = vector.load %arg2[%c2_30, %c0_31] : memref<9x8xf32, #tpu.memory_space<vmem>>, vector<1x8xf32>
    %25 = vector.shape_cast %24 : vector<1x8xf32> to vector<8xf32>
    %26 = vector.shape_cast %25 : vector<8xf32> to vector<1x1x8xf32>
    %27 = vector.broadcast %26 : vector<1x1x8xf32> to vector<16x16x8xf32>
    %28 = arith.addf %23, %27 : vector<16x16x8xf32>
    %29 = arith.maximumf %22, %28 : vector<16x16x8xf32>
    %c1_32 = arith.constant 1 : index
    %c0_33 = arith.constant 0 : index
    %c0_34 = arith.constant 0 : index
    %30 = vector.load %arg4[%c1_32, %c0_33, %c0_34] : memref<18x18x8xf32, #tpu.memory_space<vmem>>, vector<16x16x8xf32>
    %c3 = arith.constant 3 : index
    %c0_35 = arith.constant 0 : index
    %31 = vector.load %arg2[%c3, %c0_35] : memref<9x8xf32, #tpu.memory_space<vmem>>, vector<1x8xf32>
    %32 = vector.shape_cast %31 : vector<1x8xf32> to vector<8xf32>
    %33 = vector.shape_cast %32 : vector<8xf32> to vector<1x1x8xf32>
    %34 = vector.broadcast %33 : vector<1x1x8xf32> to vector<16x16x8xf32>
    %35 = arith.addf %30, %34 : vector<16x16x8xf32>
    %36 = arith.maximumf %29, %35 : vector<16x16x8xf32>
    %c1_36 = arith.constant 1 : index
    %c1_37 = arith.constant 1 : index
    %c0_38 = arith.constant 0 : index
    %37 = vector.load %arg4[%c1_36, %c1_37, %c0_38] : memref<18x18x8xf32, #tpu.memory_space<vmem>>, vector<16x16x8xf32>
    %c4 = arith.constant 4 : index
    %c0_39 = arith.constant 0 : index
    %38 = vector.load %arg2[%c4, %c0_39] : memref<9x8xf32, #tpu.memory_space<vmem>>, vector<1x8xf32>
    %39 = vector.shape_cast %38 : vector<1x8xf32> to vector<8xf32>
    %40 = vector.shape_cast %39 : vector<8xf32> to vector<1x1x8xf32>
    %41 = vector.broadcast %40 : vector<1x1x8xf32> to vector<16x16x8xf32>
    %42 = arith.addf %37, %41 : vector<16x16x8xf32>
    %43 = arith.maximumf %36, %42 : vector<16x16x8xf32>
    %c1_40 = arith.constant 1 : index
    %c2_41 = arith.constant 2 : index
    %c0_42 = arith.constant 0 : index
    %44 = vector.load %arg4[%c1_40, %c2_41, %c0_42] : memref<18x18x8xf32, #tpu.memory_space<vmem>>, vector<16x16x8xf32>
    %c5 = arith.constant 5 : index
    %c0_43 = arith.constant 0 : index
    %45 = vector.load %arg2[%c5, %c0_43] : memref<9x8xf32, #tpu.memory_space<vmem>>, vector<1x8xf32>
    %46 = vector.shape_cast %45 : vector<1x8xf32> to vector<8xf32>
    %47 = vector.shape_cast %46 : vector<8xf32> to vector<1x1x8xf32>
    %48 = vector.broadcast %47 : vector<1x1x8xf32> to vector<16x16x8xf32>
    %49 = arith.addf %44, %48 : vector<16x16x8xf32>
    %50 = arith.maximumf %43, %49 : vector<16x16x8xf32>
    %c2_44 = arith.constant 2 : index
    %c0_45 = arith.constant 0 : index
    %c0_46 = arith.constant 0 : index
    %51 = vector.load %arg4[%c2_44, %c0_45, %c0_46] : memref<18x18x8xf32, #tpu.memory_space<vmem>>, vector<16x16x8xf32>
    %c6 = arith.constant 6 : index
    %c0_47 = arith.constant 0 : index
    %52 = vector.load %arg2[%c6, %c0_47] : memref<9x8xf32, #tpu.memory_space<vmem>>, vector<1x8xf32>
    %53 = vector.shape_cast %52 : vector<1x8xf32> to vector<8xf32>
    %54 = vector.shape_cast %53 : vector<8xf32> to vector<1x1x8xf32>
    %55 = vector.broadcast %54 : vector<1x1x8xf32> to vector<16x16x8xf32>
    %56 = arith.addf %51, %55 : vector<16x16x8xf32>
    %57 = arith.maximumf %50, %56 : vector<16x16x8xf32>
    %c2_48 = arith.constant 2 : index
    %c1_49 = arith.constant 1 : index
    %c0_50 = arith.constant 0 : index
    %58 = vector.load %arg4[%c2_48, %c1_49, %c0_50] : memref<18x18x8xf32, #tpu.memory_space<vmem>>, vector<16x16x8xf32>
    %c7 = arith.constant 7 : index
    %c0_51 = arith.constant 0 : index
    %59 = vector.load %arg2[%c7, %c0_51] : memref<9x8xf32, #tpu.memory_space<vmem>>, vector<1x8xf32>
    %60 = vector.shape_cast %59 : vector<1x8xf32> to vector<8xf32>
    %61 = vector.shape_cast %60 : vector<8xf32> to vector<1x1x8xf32>
    %62 = vector.broadcast %61 : vector<1x1x8xf32> to vector<16x16x8xf32>
    %63 = arith.addf %58, %62 : vector<16x16x8xf32>
    %64 = arith.maximumf %57, %63 : vector<16x16x8xf32>
    %c2_52 = arith.constant 2 : index
    %c2_53 = arith.constant 2 : index
    %c0_54 = arith.constant 0 : index
    %65 = vector.load %arg4[%c2_52, %c2_53, %c0_54] : memref<18x18x8xf32, #tpu.memory_space<vmem>>, vector<16x16x8xf32>
    %c8 = arith.constant 8 : index
    %c0_55 = arith.constant 0 : index
    %66 = vector.load %arg2[%c8, %c0_55] : memref<9x8xf32, #tpu.memory_space<vmem>>, vector<1x8xf32>
    %67 = vector.shape_cast %66 : vector<1x8xf32> to vector<8xf32>
    %68 = vector.shape_cast %67 : vector<8xf32> to vector<1x1x8xf32>
    %69 = vector.broadcast %68 : vector<1x1x8xf32> to vector<16x16x8xf32>
    %70 = arith.addf %65, %69 : vector<16x16x8xf32>
    %71 = arith.maximumf %64, %70 : vector<16x16x8xf32>
    %c0_56 = arith.constant 0 : index
    %c0_57 = arith.constant 0 : index
    %c0_58 = arith.constant 0 : index
    %72 = vector.load %arg3[%c0_56, %c0_57, %c0_58] : memref<16x16x8xf32, #tpu.memory_space<vmem>>, vector<16x16x8xf32>
    tpu.vector_store %arg3[%c0_56, %c0_57, %c0_58], %71 {strides = array<i32>} : memref<16x16x8xf32, #tpu.memory_space<vmem>>, vector<16x16x8xf32>,
    return
  }
  func.func @transform_0(%arg0: i32) -> (i32, i32, i32) {
    %c0_i32 = arith.constant 0 : i32
    %c0_i32_0 = arith.constant 0 : i32
    %c0_i32_1 = arith.constant 0 : i32
    return %c0_i32, %c0_i32_0, %arg0 : i32, i32, i32
  }
  func.func @transform_1(%arg0: i32) -> (i32, i32) {
    %c0_i32 = arith.constant 0 : i32
    %c0_i32_0 = arith.constant 0 : i32
    return %c0_i32, %arg0 : i32, i32
  }
  func.func @transform_2(%arg0: i32) -> (i32, i32, i32) {
    %c0_i32 = arith.constant 0 : i32
    %c0_i32_0 = arith.constant 0 : i32
    %c0_i32_1 = arith.constant 0 : i32
    return %c0_i32, %c0_i32_0, %arg0 : i32, i32, i32
  }
}

</mosaic_0001>

<bundles_post_ra>
// kernel: tpu_custom_call.1
= control target key start
LH: loop header
LB: loop body
LE: loop exit
PB: predicated region body
PF: predicated region fallthrough
CT: control target
= control target key end

     0   :  { %vm11_vm0 = vcmask 64512   ;;  %vm14_vm1 = vcmask 58368   ;;  %vm21_vm2 = vcmask 57344   ;;  %v1051_v0 = vmov -inf   ;;  %s1812_s0 = inlined_call_operand.vmem [shape: f32[16,16,8], index: 0, kind: input, shape index: {}]   ;;  %s1813_s1 = inlined_call_operand.vmem [shape: f32[9,8], index: 1, kind: input, shape index: {}]   ;;  %s1814_s2 = inlined_call_operand.vmem [shape: f32[16,16,8], index: 2, kind: output, shape index: {}]  }
   0x1   :  { %12 = vst.msk [vmem:[#allocation2] sm:$0xff] %vm11_vm0, %v1051_v0  ;;  %13 = vst.msk [vmem:[#allocation2 + $0x8] sm:$0xff] %vm11_vm0, %v1051_v0  ;;  %v54_v1 = vld [vmem:[%s1812_s0] sm:$0xff]  ;;  %v55_v2 = vld [vmem:[%s1812_s0 + $0x8] sm:$0xff] }
   0x2   :  { %17 = vst.msk [vmem:[#allocation2 + $0x198] sm:$0xff] %vm11_vm0, %v1051_v0  ;;  %18 = vst.msk [vmem:[#allocation2 + $0x1a0] sm:$0xff] %vm11_vm0, %v1051_v0  ;;  %v56_v3 = vld [vmem:[%s1812_s0 + $0x10] sm:$0xff]  ;;  %v57_v4 = vld [vmem:[%s1812_s0 + $0x18] sm:$0xff] }
   0x3   :  { %15 = vst.msk [vmem:[#allocation2 + $0x10] sm:$0x3] %vm14_vm1, %v1051_v0  ;;  %19 = vst.msk [vmem:[#allocation2 + $0x1a8] sm:$0x3] %vm14_vm1, %v1051_v0  ;;  %v58_v5 = vld [vmem:[%s1812_s0 + $0x20] sm:$0xff]  ;;  %v59_v6 = vld [vmem:[%s1812_s0 + $0x28] sm:$0xff] }
   0x4   :  { %22 = vst.msk [vmem:[#allocation2 + $0x18] sm:$0x1] %vm21_vm2, %v1051_v0  ;;  %23 = vst.msk [vmem:[#allocation2 + $0x30] sm:$0x1] %vm21_vm2, %v1051_v0  ;;  %v60_v7 = vld [vmem:[%s1812_s0 + $0x30] sm:$0xff]  ;;  %v61_v8 = vld [vmem:[%s1812_s0 + $0x38] sm:$0xff] }
   0x5   :  { %24 = vst.msk [vmem:[#allocation2 + $0x48] sm:$0x1] %vm21_vm2, %v1051_v0  ;;  %25 = vst.msk [vmem:[#allocation2 + $0x60] sm:$0x1] %vm21_vm2, %v1051_v0  ;;  %v62_v9 = vld [vmem:[%s1812_s0 + $0x40] sm:$0xff]  ;;  %v63_v10 = vld [vmem:[%s1812_s0 + $0x48] sm:$0xff] }
   0x6   :  { %26 = vst.msk [vmem:[#allocation2 + $0x78] sm:$0x1] %vm21_vm2, %v1051_v0  ;;  %27 = vst.msk [vmem:[#allocation2 + $0x90] sm:$0x1] %vm21_vm2, %v1051_v0  ;;  %v64_v11 = vld [vmem:[%s1812_s0 + $0x50] sm:$0xff]  ;;  %v65_v12 = vld [vmem:[%s1812_s0 + $0x58] sm:$0xff] }
   0x7   :  { %28 = vst.msk [vmem:[#allocation2 + $0xa8] sm:$0x1] %vm21_vm2, %v1051_v0  ;;  %29 = vst.msk [vmem:[#allocation2 + $0xc0] sm:$0x1] %vm21_vm2, %v1051_v0  ;;  %v66_v13 = vld [vmem:[%s1812_s0 + $0x60] sm:$0xff]  ;;  %v67_v14 = vld [vmem:[%s1812_s0 + $0x68] sm:$0xff] }
   0x8   :  { %30 = vst.msk [vmem:[#allocation2 + $0xd8] sm:$0x1] %vm21_vm2, %v1051_v0  ;;  %31 = vst.msk [vmem:[#allocation2 + $0xf0] sm:$0x1] %vm21_vm2, %v1051_v0  ;;  %v68_v15 = vld [vmem:[%s1812_s0 + $0x70] sm:$0xff]  ;;  %v69_v16 = vld [vmem:[%s1812_s0 + $0x78] sm:$0xff] }
   0x9   :  { %32 = vst.msk [vmem:[#allocation2 + $0x108] sm:$0x1] %vm21_vm2, %v1051_v0  ;;  %33 = vst.msk [vmem:[#allocation2 + $0x120] sm:$0x1] %vm21_vm2, %v1051_v0  ;;  %v70_v17 = vld [vmem:[%s1812_s0 + $0x80] sm:$0xff]  ;;  %v71_v18 = vld [vmem:[%s1812_s0 + $0x88] sm:$0xff] }
   0xa   :  { %34 = vst.msk [vmem:[#allocation2 + $0x138] sm:$0x1] %vm21_vm2, %v1051_v0  ;;  %35 = vst.msk [vmem:[#allocation2 + $0x150] sm:$0x1] %vm21_vm2, %v1051_v0  ;;  %v72_v19 = vld [vmem:[%s1812_s0 + $0x90] sm:$0xff]  ;;  %v73_v20 = vld [vmem:[%s1812_s0 + $0x98] sm:$0xff] }
   0xb   :  { %36 = vst.msk [vmem:[#allocation2 + $0x168] sm:$0x1] %vm21_vm2, %v1051_v0  ;;  %37 = vst.msk [vmem:[#allocation2 + $0x180] sm:$0x1] %vm21_vm2, %v1051_v0  ;;  %v74_v21 = vld [vmem:[%s1812_s0 + $0xa0] sm:$0xff]  ;;  %v75_v22 = vld [vmem:[%s1812_s0 + $0xa8] sm:$0xff] }
   0xc   :  { %38 = vst.msk [vmem:[#allocation2 + $0x29] sm:$0x1] %vm21_vm2, %v1051_v0  ;;  %39 = vst.msk [vmem:[#allocation2 + $0x41] sm:$0x1] %vm21_vm2, %v1051_v0  ;;  %v76_v23 = vld [vmem:[%s1812_s0 + $0xb0] sm:$0xff]  ;;  %v77_v24 = vld [vmem:[%s1812_s0 + $0xb8] sm:$0xff] }
   0xd   :  { %40 = vst.msk [vmem:[#allocation2 + $0x59] sm:$0x1] %vm21_vm2, %v1051_v0  ;;  %41 = vst.msk [vmem:[#allocation2 + $0x71] sm:$0x1] %vm21_vm2, %v1051_v0  ;;  %v78_v25 = vld [vmem:[%s1812_s0 + $0xc0] sm:$0xff]  ;;  %v79_v26 = vld [vmem:[%s1812_s0 + $0xc8] sm:$0xff] }
   0xe   :  { %42 = vst.msk [vmem:[#allocation2 + $0x89] sm:$0x1] %vm21_vm2, %v1051_v0  ;;  %43 = vst.msk [vmem:[#allocation2 + $0xa1] sm:$0x1] %vm21_vm2, %v1051_v0  ;;  %v80_v27 = vld [vmem:[%s1812_s0 + $0xd0] sm:$0xff]  ;;  %v81_v28 = vld [vmem:[%s1812_s0 + $0xd8] sm:$0xff] }
   0xf   :  { %44 = vst.msk [vmem:[#allocation2 + $0xb9] sm:$0x1] %vm21_vm2, %v1051_v0  ;;  %45 = vst.msk [vmem:[#allocation2 + $0xd1] sm:$0x1] %vm21_vm2, %v1051_v0  ;;  %v82_v29 = vld [vmem:[%s1812_s0 + $0xe0] sm:$0xff]  ;;  %v83_v30 = vld [vmem:[%s1812_s0 + $0xe8] sm:$0xff] }
  0x10   :  { %46 = vst.msk [vmem:[#allocation2 + $0xe9] sm:$0x1] %vm21_vm2, %v1051_v0  ;;  %47 = vst.msk [vmem:[#allocation2 + $0x101] sm:$0x1] %vm21_vm2, %v1051_v0  ;;  %v84_v31 = vld [vmem:[%s1812_s0 + $0xf0] sm:$0xff]  ;;  %v85_v32 = vld [vmem:[%s1812_s0 + $0xf8] sm:$0xff] }
  0x11   :  { %48 = vst.msk [vmem:[#allocation2 + $0x119] sm:$0x1] %vm21_vm2, %v1051_v0  ;;  %49 = vst.msk [vmem:[#allocation2 + $0x131] sm:$0x1] %vm21_vm2, %v1051_v0  ;;  %v118_v33 = vld [vmem:[#allocation2] sm:$0xff]  ;;  %v119_v58 = vld [vmem:[#allocation2 + $0x8] sm:$0xff] }
  0x12   :  { %50 = vst.msk [vmem:[#allocation2 + $0x149] sm:$0x1] %vm21_vm2, %v1051_v0  ;;  %51 = vst.msk [vmem:[#allocation2 + $0x161] sm:$0x1] %vm21_vm2, %v1051_v0  ;;  %v1234_v34 = vld [vmem:[%s1813_s1] ss:$0 sm:$0xff] }
  0x13   :  { %52 = vst.msk [vmem:[#allocation2 + $0x179] sm:$0x1] %vm21_vm2, %v1051_v0  ;;  %53 = vst.msk [vmem:[#allocation2 + $0x191] sm:$0x1] %vm21_vm2, %v1051_v0  ;;  %v187_v35 = vld [vmem:[#allocation2 + $0x1] sm:$0xff]  ;;  %v155_v37 = vadd.f32 %v1234_v34, %v118_v33  ;;  %v156_v62 = vadd.f32 %v1234_v34, %v119_v58  ;;  %v188_v63 = vld [vmem:[#allocation2 + $0x9] sm:$0xff] }
  0x14   :  { %86 = vst.msk [vmem:[#allocation2 + $0x19] sm:$0xff] %vm11_vm0, %v54_v1  ;;  %87 = vst.msk [vmem:[#allocation2 + $0x21] sm:$0xff] %vm11_vm0, %v55_v2  ;;  %v1239_v36 = vld [vmem:[%s1813_s1 + $0x1] ss:$0 sm:$0xff]  ;;  %v288_v39 = vld [vmem:[#allocation2 + $0x2] sm:$0xff] }
  0x15   :  { %88 = vst.msk [vmem:[#allocation2 + $0x31] sm:$0xff] %vm11_vm0, %v56_v3  ;;  %89 = vst.msk [vmem:[#allocation2 + $0x39] sm:$0xff] %vm11_vm0, %v57_v4  ;;  %v224_v38 = vadd.f32 %v1239_v36, %v187_v35  ;;  %v1246_v40 = vld [vmem:[%s1813_s1 + $0x2] ss:$0 sm:$0xff]  ;;  %v1252_v43 = vld [vmem:[%s1813_s1 + $0x3] ss:$0 sm:$0xff]  ;;  %v225_v4 = vadd.f32 %v1239_v36, %v188_v63 }
  0x16   :  { %90 = vst.msk [vmem:[#allocation2 + $0x49] sm:$0xff] %vm11_vm0, %v58_v5  ;;  %91 = vst.msk [vmem:[#allocation2 + $0x51] sm:$0xff] %vm11_vm0, %v59_v6  ;;  %v325_v42 = vadd.f32 %v1246_v40, %v288_v39  ;;  %v1258_v47 = vld [vmem:[%s1813_s1 + $0x4] ss:$0 sm:$0xff]  ;;  %v1263_v49 = vld [vmem:[%s1813_s1 + $0x5] ss:$0 sm:$0xff] }
  0x17   :  { %92 = vst.msk [vmem:[#allocation2 + $0x61] sm:$0xff] %vm11_vm0, %v60_v7  ;;  %93 = vst.msk [vmem:[#allocation2 + $0x69] sm:$0xff] %vm11_vm0, %v61_v8  ;;  %v256_v46 = vmax.f32 %v155_v37, %v224_v38  ;;  %v1269_v52 = vld [vmem:[%s1813_s1 + $0x6] ss:$0 sm:$0xff]  ;;  %v1275_v56 = vld [vmem:[%s1813_s1 + $0x7] ss:$0 sm:$0xff] }
  0x18   :  { %94 = vst.msk [vmem:[#allocation2 + $0x79] sm:$0xff] %vm11_vm0, %v62_v9  ;;  %95 = vst.msk [vmem:[#allocation2 + $0x81] sm:$0xff] %vm11_vm0, %v63_v10  ;;  %v1281_v61 = vld [vmem:[%s1813_s1 + $0x8] ss:$0 sm:$0xff]  ;;  %v289_v0 = vld [vmem:[#allocation2 + $0xa] sm:$0xff] }
  0x19   :  { %96 = vst.msk [vmem:[#allocation2 + $0x91] sm:$0xff] %vm11_vm0, %v64_v11  ;;  %97 = vst.msk [vmem:[#allocation2 + $0x99] sm:$0xff] %vm11_vm0, %v65_v12  ;;  %v357_v54 = vmax.f32 %v256_v46, %v325_v42  ;;  %v326_v5 = vadd.f32 %v1246_v40, %v289_v0 }
  0x1a   :  { %98 = vst.msk [vmem:[#allocation2 + $0xa9] sm:$0xff] %vm11_vm0, %v66_v13  ;;  %99 = vst.msk [vmem:[#allocation2 + $0xb1] sm:$0xff] %vm11_vm0, %v67_v14 }
  0x1b   :  { %100 = vst.msk [vmem:[#allocation2 + $0xc1] sm:$0xff] %vm11_vm0, %v68_v15  ;;  %101 = vst.msk [vmem:[#allocation2 + $0xc9] sm:$0xff] %vm11_vm0, %v69_v16  ;;  %v389_v41 = vld [vmem:[#allocation2 + $0x18] sm:$0xff]  ;;  %v390_v6 = vld [vmem:[#allocation2 + $0x20] sm:$0xff]  ;;  %v257_v15 = vmax.f32 %v156_v62, %v225_v4 }
  0x1c   :  { %102 = vst.msk [vmem:[#allocation2 + $0xd9] sm:$0xff] %vm11_vm0, %v70_v17  ;;  %103 = vst.msk [vmem:[#allocation2 + $0xe1] sm:$0xff] %vm11_vm0, %v71_v18  ;;  %v490_v44 = vld [vmem:[#allocation2 + $0x19] sm:$0xff]  ;;  %v157_v45 = vadd.f32 %v1234_v34, %v389_v41  ;;  %v693_v51 = vld [vmem:[#allocation2 + $0x30] sm:$0xff]  ;;  %v426_v55 = vadd.f32 %v1252_v43, %v389_v41  ;;  %v427_v18 = vadd.f32 %v1252_v43, %v390_v6 }
  0x1d   :  { %104 = vst.msk [vmem:[#allocation2 + $0xf1] sm:$0xff] %vm11_vm0, %v72_v19  ;;  %105 = vst.msk [vmem:[#allocation2 + $0xf9] sm:$0xff] %vm11_vm0, %v73_v20  ;;  %v591_v48 = vld [vmem:[#allocation2 + $0x1a] sm:$0xff]  ;;  %v226_v50 = vadd.f32 %v1239_v36, %v490_v44  ;;  %v794_v53 = vld [vmem:[#allocation2 + $0x31] sm:$0xff]  ;;  %v527_v60 = vadd.f32 %v1258_v47, %v490_v44  ;;  %v730_v7 = vadd.f32 %v1269_v52, %v693_v51 }
  0x1e   :  { %106 = vst.msk [vmem:[#allocation2 + $0x109] sm:$0xff] %vm11_vm0, %v74_v21  ;;  %107 = vst.msk [vmem:[#allocation2 + $0x111] sm:$0xff] %vm11_vm0, %v75_v22  ;;  %v895_v57 = vld [vmem:[#allocation2 + $0x32] sm:$0xff]  ;;  %v327_v1 = vadd.f32 %v1246_v40, %v591_v48  ;;  %v458_v2 = vmax.f32 %v357_v54, %v426_v55  ;;  %v628_v3 = vadd.f32 %v1263_v49, %v591_v48  ;;  %v491_v8 = vld [vmem:[#allocation2 + $0x21] sm:$0xff] }
  0x1f   :  { %108 = vst.msk [vmem:[#allocation2 + $0x121] sm:$0xff] %vm11_vm0, %v76_v23  ;;  %109 = vst.msk [vmem:[#allocation2 + $0x129] sm:$0xff] %vm11_vm0, %v77_v24  ;;  %v258_v59 = vmax.f32 %v157_v45, %v226_v50  ;;  %v428_v10 = vadd.f32 %v1252_v43, %v693_v51  ;;  %v159_v11 = vadd.f32 %v1234_v34, %v693_v51  ;;  %v592_v16 = vld [vmem:[#allocation2 + $0x22] sm:$0xff]  ;;  %v694_v17 = vld [vmem:[#allocation2 + $0x38] sm:$0xff] }
  0x20   :  { %110 = vst.msk [vmem:[#allocation2 + $0x139] sm:$0xff] %vm11_vm0, %v78_v25  ;;  %111 = vst.msk [vmem:[#allocation2 + $0x141] sm:$0xff] %vm11_vm0, %v79_v26  ;;  %v559_v12 = vmax.f32 %v458_v2, %v527_v60  ;;  %v831_v13 = vadd.f32 %v1275_v56, %v794_v53  ;;  %v932_v14 = vadd.f32 %v1281_v61, %v895_v57  ;;  %v795_v24 = vld [vmem:[#allocation2 + $0x39] sm:$0xff]  ;;  %v1296_v25 = vld [vmem:[#allocation2 + $0x48] sm:$0xff] }
  0x21   :  { %112 = vst.msk [vmem:[#allocation2 + $0x151] sm:$0xff] %vm11_vm0, %v80_v27  ;;  %113 = vst.msk [vmem:[#allocation2 + $0x159] sm:$0xff] %vm11_vm0, %v81_v28  ;;  %v359_v9 = vmax.f32 %v258_v59, %v327_v1  ;;  %v529_v20 = vadd.f32 %v1258_v47, %v794_v53  ;;  %v630_v21 = vadd.f32 %v1263_v49, %v895_v57  ;;  %v796_v35 = vld [vmem:[#allocation2 + $0x49] sm:$0xff]  ;;  %v896_v48 = vld [vmem:[#allocation2 + $0x3a] sm:$0xff] }
  0x22   :  { %114 = vst.msk [vmem:[#allocation2 + $0x169] sm:$0xff] %vm11_vm0, %v82_v29  ;;  %115 = vst.msk [vmem:[#allocation2 + $0x171] sm:$0xff] %vm11_vm0, %v83_v30  ;;  %v660_v22 = vmax.f32 %v559_v12, %v628_v3  ;;  %v358_v23 = vmax.f32 %v257_v15, %v326_v5  ;;  %v158_v26 = vadd.f32 %v1234_v34, %v390_v6  ;;  %v897_v50 = vld [vmem:[#allocation2 + $0x4a] sm:$0xff] }
  0x23   :  { %116 = vst.msk [vmem:[#allocation2 + $0x181] sm:$0xff] %vm11_vm0, %v84_v31  ;;  %117 = vst.msk [vmem:[#allocation2 + $0x189] sm:$0xff] %vm11_vm0, %v85_v32  ;;  %v460_v19 = vmax.f32 %v359_v9, %v428_v10  ;;  %v227_v27 = vadd.f32 %v1239_v36, %v491_v8  ;;  %v528_v28 = vadd.f32 %v1258_v47, %v491_v8  ;;  %v696_v1 = vld [vmem:[#allocation2 + $0x50] sm:$0xff] }
  0x24   :  { %v629_v29 = vadd.f32 %v1263_v49, %v592_v16  ;;  %v731_v30 = vadd.f32 %v1269_v52, %v694_v17  ;;  %v762_v32 = vmax.f32 %v660_v22, %v730_v7  ;;  %v459_v33 = vmax.f32 %v358_v23, %v427_v18  ;;  %v898_v8 = vld [vmem:[#allocation2 + $0x52] sm:$0xff]  ;;  %v697_v22 = vld [vmem:[#allocation2 + $0x60] sm:$0xff] }
  0x25   :  { %v561_v31 = vmax.f32 %v460_v19, %v529_v20  ;;  %v259_v37 = vmax.f32 %v158_v26, %v227_v27  ;;  %v328_v38 = vadd.f32 %v1246_v40, %v592_v16  ;;  %v832_v39 = vadd.f32 %v1275_v56, %v795_v24  ;;  %v798_v23 = vld [vmem:[#allocation2 + $0x61] sm:$0xff] }
  0x26   :  { %v732_v42 = vadd.f32 %v1269_v52, %v1296_v25  ;;  %v429_v44 = vadd.f32 %v1252_v43, %v694_v17  ;;  %v863_v45 = vmax.f32 %v762_v32, %v831_v13  ;;  %v560_v46 = vmax.f32 %v459_v33, %v528_v28 }
  0x27   :  { %v662_v41 = vmax.f32 %v561_v31, %v630_v21  ;;  %v360_v51 = vmax.f32 %v259_v37, %v328_v38  ;;  %v228_v54 = vadd.f32 %v1239_v36, %v794_v53  ;;  %v833_v58 = vadd.f32 %v1275_v56, %v796_v35 }
  0x28   :  { %v530_v59 = vadd.f32 %v1258_v47, %v795_v24  ;;  %v329_v60 = vadd.f32 %v1246_v40, %v895_v57  ;;  %v964_v62 = vmax.f32 %v863_v45, %v932_v14  ;;  %v661_v63 = vmax.f32 %v560_v46, %v629_v29  ;;  %v797_v57 = vld [vmem:[#allocation2 + $0x51] sm:$0xff]  ;;  %v698_v46 = vld [vmem:[#allocation2 + $0x68] sm:$0xff] }
  0x29   :  { %v764_v55 = vmax.f32 %v662_v41, %v732_v42  ;;  %v461_v0 = vmax.f32 %v360_v51, %v429_v44  ;;  %v260_v2 = vmax.f32 %v159_v11, %v228_v54  ;;  %v933_v3 = vadd.f32 %v1281_v61, %v896_v48 }
  0x2a   :  { %v934_v5 = vadd.f32 %v1281_v61, %v897_v50  ;;  %v631_v6 = vadd.f32 %v1263_v49, %v896_v48  ;;  %996 = vst.msk [vmem:[%s1814_s2] sm:$0xff] %vm11_vm0, %v964_v62  ;;  %v763_v53 = vmax.f32 %v661_v63, %v731_v30  ;;  %v430_v10 = vadd.f32 %v1252_v43, %v1296_v25  ;;  %v899_v30 = vld [vmem:[#allocation2 + $0x62] sm:$0xff] }
  0x2b   :  { %v865_v4 = vmax.f32 %v764_v55, %v833_v58  ;;  %v562_v7 = vmax.f32 %v461_v0, %v530_v59  ;;  %v361_v9 = vmax.f32 %v260_v2, %v329_v60  ;;  %v733_v12 = vadd.f32 %v1269_v52, %v696_v1  ;;  %v900_v59 = vld [vmem:[#allocation2 + $0x6a] sm:$0xff] }
  0x2c   :  { %v160_v13 = vadd.f32 %v1234_v34, %v694_v17  ;;  %v229_v14 = vadd.f32 %v1239_v36, %v795_v24  ;;  %v864_v15 = vmax.f32 %v763_v53, %v832_v39  ;;  %v531_v19 = vadd.f32 %v1258_v47, %v796_v35 }
  0x2d   :  { %v966_v11 = vmax.f32 %v865_v4, %v934_v5  ;;  %v663_v16 = vmax.f32 %v562_v7, %v631_v6  ;;  %v462_v18 = vmax.f32 %v361_v9, %v430_v10  ;;  %v834_v20 = vadd.f32 %v1275_v56, %v797_v57  ;;  %v699_v4 = vld [vmem:[#allocation2 + $0x78] sm:$0xff] }
  0x2e   :  { %v935_v21 = vadd.f32 %v1281_v61, %v898_v8  ;;  %v261_v26 = vmax.f32 %v160_v13, %v229_v14  ;;  %v330_v17 = vadd.f32 %v1246_v40, %v896_v48  ;;  %v965_v24 = vmax.f32 %v864_v15, %v933_v3  ;;  %v799_v48 = vld [vmem:[#allocation2 + $0x69] sm:$0xff] }
  0x2f   :  { %998 = vst.msk [vmem:[%s1814_s2 + $0x10] sm:$0xff] %vm11_vm0, %v966_v11  ;;  %v765_v27 = vmax.f32 %v663_v16, %v733_v12  ;;  %v563_v28 = vmax.f32 %v462_v18, %v531_v19  ;;  %v632_v29 = vadd.f32 %v1263_v49, %v897_v50  ;;  %v431_v32 = vadd.f32 %v1252_v43, %v696_v1  ;;  %v901_v12 = vld [vmem:[#allocation2 + $0x7a] sm:$0xff] }
  0x30   :  { %v362_v31 = vmax.f32 %v261_v26, %v330_v17  ;;  %v161_v33 = vadd.f32 %v1234_v34, %v1296_v25  ;;  %v230_v37 = vadd.f32 %v1239_v36, %v796_v35  ;;  %997 = vst.msk [vmem:[%s1814_s2 + $0x8] sm:$0xff] %vm11_vm0, %v965_v24  ;;  %v734_v41 = vadd.f32 %v1269_v52, %v697_v22  ;;  %v700_v26 = vld [vmem:[#allocation2 + $0x80] sm:$0xff] }
  0x31   :  { %v866_v38 = vmax.f32 %v765_v27, %v834_v20  ;;  %v664_v39 = vmax.f32 %v563_v28, %v632_v29  ;;  %v835_v42 = vadd.f32 %v1275_v56, %v798_v23  ;;  %v532_v45 = vadd.f32 %v1258_v47, %v797_v57 }
  0x32   :  { %v463_v44 = vmax.f32 %v362_v31, %v431_v32  ;;  %v262_v51 = vmax.f32 %v161_v33, %v230_v37  ;;  %v331_v25 = vadd.f32 %v1246_v40, %v897_v50  ;;  %v936_v55 = vadd.f32 %v1281_v61, %v899_v30  ;;  %v801_v31 = vld [vmem:[#allocation2 + $0x81] sm:$0xff] }
  0x33   :  { %v967_v35 = vmax.f32 %v866_v38, %v935_v21  ;;  %v766_v54 = vmax.f32 %v664_v39, %v734_v41  ;;  %v633_v58 = vadd.f32 %v1263_v49, %v898_v8  ;;  %v432_v63 = vadd.f32 %v1252_v43, %v697_v22  ;;  %v1372_v32 = vld [vmem:[#allocation2 + $0x82] sm:$0xff] }
  0x34   :  { %v564_v60 = vmax.f32 %v463_v44, %v532_v45  ;;  %v363_v62 = vmax.f32 %v262_v51, %v331_v25  ;;  %v162_v0 = vadd.f32 %v1234_v34, %v696_v1  ;;  %v735_v50 = vadd.f32 %v1269_v52, %v698_v46  ;;  %v800_v1 = vld [vmem:[#allocation2 + $0x79] sm:$0xff] }
  0x35   :  { %999 = vst.msk [vmem:[%s1814_s2 + $0x18] sm:$0xff] %vm11_vm0, %v967_v35  ;;  %v867_v2 = vmax.f32 %v766_v54, %v835_v42  ;;  %v836_v3 = vadd.f32 %v1275_v56, %v799_v48  ;;  %v231_v5 = vadd.f32 %v1239_v36, %v797_v57  ;;  %v937_v53 = vadd.f32 %v1281_v61, %v900_v59 }
  0x36   :  { %v665_v6 = vmax.f32 %v564_v60, %v633_v58  ;;  %v464_v7 = vmax.f32 %v363_v62, %v432_v63  ;;  %v533_v9 = vadd.f32 %v1258_v47, %v798_v23  ;;  %v634_v11 = vadd.f32 %v1263_v49, %v899_v30  ;;  %v701_v58 = vld [vmem:[#allocation2 + $0x90] sm:$0xff] }
  0x37   :  { %v968_v10 = vmax.f32 %v867_v2, %v936_v55  ;;  %v263_v13 = vmax.f32 %v162_v0, %v231_v5  ;;  %v332_v14 = vadd.f32 %v1246_v40, %v898_v8  ;;  %v736_v18 = vadd.f32 %v1269_v52, %v699_v4  ;;  %v802_v60 = vld [vmem:[#allocation2 + $0x91] sm:$0xff] }
  0x38   :  { %v767_v15 = vmax.f32 %v665_v6, %v735_v50  ;;  %v565_v16 = vmax.f32 %v464_v7, %v533_v9  ;;  %v163_v57 = vadd.f32 %v1234_v34, %v697_v22  ;;  %v837_v19 = vadd.f32 %v1275_v56, %v800_v1  ;;  %v903_v6 = vld [vmem:[#allocation2 + $0x92] sm:$0xff] }
  0x39   :  { %1000 = vst.msk [vmem:[%s1814_s2 + $0x20] sm:$0xff] %vm11_vm0, %v968_v10  ;;  %v364_v20 = vmax.f32 %v263_v13, %v332_v14  ;;  %v433_v21 = vadd.f32 %v1252_v43, %v698_v46  ;;  %v232_v17 = vadd.f32 %v1239_v36, %v798_v23  ;;  %v938_v27 = vadd.f32 %v1281_v61, %v901_v12 }
  0x3a   :  { %v868_v8 = vmax.f32 %v767_v15, %v836_v3  ;;  %v666_v24 = vmax.f32 %v565_v16, %v634_v11  ;;  %v534_v28 = vadd.f32 %v1258_v47, %v799_v48  ;;  %v635_v29 = vadd.f32 %v1263_v49, %v900_v59  ;;  %v702_v15 = vld [vmem:[#allocation2 + $0x98] sm:$0xff] }
  0x3b   :  { %v465_v22 = vmax.f32 %v364_v20, %v433_v21  ;;  %v264_v33 = vmax.f32 %v163_v57, %v232_v17  ;;  %v333_v37 = vadd.f32 %v1246_v40, %v899_v30  ;;  %v737_v41 = vadd.f32 %v1269_v52, %v700_v26  ;;  %v803_v16 = vld [vmem:[#allocation2 + $0x99] sm:$0xff] }
  0x3c   :  { %v969_v38 = vmax.f32 %v868_v8, %v937_v53  ;;  %v768_v39 = vmax.f32 %v666_v24, %v736_v18  ;;  %v164_v23 = vadd.f32 %v1234_v34, %v698_v46  ;;  %v434_v45 = vadd.f32 %v1252_v43, %v699_v4  ;;  %v1400_v18 = vld [vmem:[#allocation2 + $0x9a] sm:$0xff] }
  0x3d   :  { %v566_v42 = vmax.f32 %v465_v22, %v534_v28  ;;  %v365_v44 = vmax.f32 %v264_v33, %v333_v37  ;;  %v233_v51 = vadd.f32 %v1239_v36, %v799_v48  ;;  %v838_v30 = vadd.f32 %v1275_v56, %v801_v31 }
  0x3e   :  { %1001 = vst.msk [vmem:[%s1814_s2 + $0x28] sm:$0xff] %vm11_vm0, %v969_v38  ;;  %v869_v25 = vmax.f32 %v768_v39, %v837_v19  ;;  %v939_v35 = vadd.f32 %v1281_v61, %v1372_v32  ;;  %v535_v54 = vadd.f32 %v1258_v47, %v800_v1  ;;  %v334_v48 = vadd.f32 %v1246_v40, %v900_v59 }
  0x3f   :  { %v667_v46 = vmax.f32 %v566_v42, %v635_v29  ;;  %v466_v55 = vmax.f32 %v365_v44, %v434_v45  ;;  %v265_v62 = vmax.f32 %v164_v23, %v233_v51  ;;  %v636_v0 = vadd.f32 %v1263_v49, %v901_v12  ;;  %v905_v44 = vld [vmem:[#allocation2 + $0xaa] sm:$0xff] }
  0x40   :  { %v970_v63 = vmax.f32 %v869_v25, %v938_v27  ;;  %v435_v2 = vadd.f32 %v1252_v43, %v700_v26  ;;  %v165_v50 = vadd.f32 %v1234_v34, %v699_v4  ;;  %v234_v7 = vadd.f32 %v1239_v36, %v800_v1  ;;  %v703_v27 = vld [vmem:[#allocation2 + $0xa8] sm:$0xff] }
  0x41   :  { %v769_v3 = vmax.f32 %v667_v46, %v737_v41  ;;  %v567_v5 = vmax.f32 %v466_v55, %v535_v54  ;;  %v366_v53 = vmax.f32 %v265_v62, %v334_v48  ;;  %v738_v59 = vadd.f32 %v1269_v52, %v701_v58  ;;  %v804_v41 = vld [vmem:[#allocation2 + $0xa9] sm:$0xff] }
  0x42   :  { %1002 = vst.msk [vmem:[%s1814_s2 + $0x30] sm:$0xff] %vm11_vm0, %v970_v63  ;;  %v839_v9 = vadd.f32 %v1275_v56, %v802_v60  ;;  %v536_v10 = vadd.f32 %v1258_v47, %v801_v31  ;;  %v335_v11 = vadd.f32 %v1246_v40, %v901_v12  ;;  %v266_v1 = vmax.f32 %v165_v50, %v234_v7  ;;  %v704_v62 = vld [vmem:[#allocation2 + $0xb0] sm:$0xff] }
  0x43   :  { %v870_v4 = vmax.f32 %v769_v3, %v838_v30  ;;  %v668_v13 = vmax.f32 %v567_v5, %v636_v0  ;;  %v467_v14 = vmax.f32 %v366_v53, %v435_v2  ;;  %v940_v57 = vadd.f32 %v1281_v61, %v903_v6  ;;  %v805_v3 = vld [vmem:[#allocation2 + $0xb1] sm:$0xff] }
  0x44   :  { %v637_v19 = vadd.f32 %v1263_v49, %v1372_v32  ;;  %v436_v20 = vadd.f32 %v1252_v43, %v701_v58  ;;  %v166_v21 = vadd.f32 %v1234_v34, %v700_v26  ;;  %v367_v24 = vmax.f32 %v266_v1, %v335_v11  ;;  %v1433_v5 = vld [vmem:[#allocation2 + $0xb2] sm:$0xff] }
  0x45   :  { %v971_v17 = vmax.f32 %v870_v4, %v939_v35  ;;  %v770_v8 = vmax.f32 %v668_v13, %v738_v59  ;;  %v568_v12 = vmax.f32 %v467_v14, %v536_v10  ;;  %v739_v28 = vadd.f32 %v1269_v52, %v702_v15 }
  0x46   :  { %v840_v22 = vadd.f32 %v1275_v56, %v803_v16  ;;  %v941_v29 = vadd.f32 %v1281_v61, %v1400_v18  ;;  %v235_v33 = vadd.f32 %v1239_v36, %v801_v31  ;;  %v468_v38 = vmax.f32 %v367_v24, %v436_v20 }
  0x47   :  { %1003 = vst.msk [vmem:[%s1814_s2 + $0x38] sm:$0xff] %vm11_vm0, %v971_v17  ;;  %v871_v26 = vmax.f32 %v770_v8, %v839_v9  ;;  %v669_v37 = vmax.f32 %v568_v12, %v637_v19  ;;  %v537_v39 = vadd.f32 %v1258_v47, %v802_v60  ;;  %v638_v23 = vadd.f32 %v1263_v49, %v903_v6  ;;  %v806_v17 = vld [vmem:[#allocation2 + $0xc1] sm:$0xff] }
  0x48   :  { %v740_v42 = vadd.f32 %v1269_v52, %v703_v27  ;;  %v267_v45 = vmax.f32 %v166_v21, %v235_v33  ;;  %v336_v31 = vadd.f32 %v1246_v40, %v1372_v32  ;;  %v167_v35 = vadd.f32 %v1234_v34, %v701_v58  ;;  %v705_v21 = vld [vmem:[#allocation2 + $0xc0] sm:$0xff] }
  0x49   :  { %v972_v51 = vmax.f32 %v871_v26, %v940_v57  ;;  %v771_v25 = vmax.f32 %v669_v37, %v739_v28  ;;  %v569_v30 = vmax.f32 %v468_v38, %v537_v39  ;;  %v841_v54 = vadd.f32 %v1275_v56, %v804_v41  ;;  %v907_v26 = vld [vmem:[#allocation2 + $0xc2] sm:$0xff] }
  0x4a   :  { %v368_v46 = vmax.f32 %v267_v45, %v336_v31  ;;  %v437_v55 = vadd.f32 %v1252_v43, %v702_v15  ;;  %v236_v48 = vadd.f32 %v1239_v36, %v802_v60  ;;  %v942_v0 = vadd.f32 %v1281_v61, %v905_v44 }
  0x4b   :  { %1004 = vst.msk [vmem:[%s1814_s2 + $0x40] sm:$0xff] %vm11_vm0, %v972_v51  ;;  %v872_v63 = vmax.f32 %v771_v25, %v840_v22  ;;  %v670_v32 = vmax.f32 %v569_v30, %v638_v23  ;;  %v538_v2 = vadd.f32 %v1258_v47, %v803_v16  ;;  %v639_v50 = vadd.f32 %v1263_v49, %v1400_v18  ;;  %v706_v51 = vld [vmem:[#allocation2 + $0xc8] sm:$0xff] }
  0x4c   :  { %v469_v58 = vmax.f32 %v368_v46, %v437_v55  ;;  %v268_v53 = vmax.f32 %v167_v35, %v236_v48  ;;  %v337_v60 = vadd.f32 %v1246_v40, %v903_v6  ;;  %v741_v9 = vadd.f32 %v1269_v52, %v704_v62  ;;  %v807_v25 = vld [vmem:[#allocation2 + $0xc9] sm:$0xff] }
  0x4d   :  { %v973_v7 = vmax.f32 %v872_v63, %v941_v29  ;;  %v772_v59 = vmax.f32 %v670_v32, %v740_v42  ;;  %v168_v10 = vadd.f32 %v1234_v34, %v702_v15  ;;  %v438_v13 = vadd.f32 %v1252_v43, %v703_v27  ;;  %v1462_v30 = vld [vmem:[#allocation2 + $0xca] sm:$0xff] }
  0x4e   :  { %v570_v11 = vmax.f32 %v469_v58, %v538_v2  ;;  %v369_v4 = vmax.f32 %v268_v53, %v337_v60  ;;  %v237_v14 = vadd.f32 %v1239_v36, %v803_v16  ;;  %v842_v6 = vadd.f32 %v1275_v56, %v805_v3 }
  0x4f   :  { %1005 = vst.msk [vmem:[%s1814_s2 + $0x48] sm:$0xff] %vm11_vm0, %v973_v7  ;;  %v873_v1 = vmax.f32 %v772_v59, %v841_v54  ;;  %v943_v57 = vadd.f32 %v1281_v61, %v1433_v5  ;;  %v539_v19 = vadd.f32 %v1258_v47, %v804_v41  ;;  %v338_v16 = vadd.f32 %v1246_v40, %v1400_v18 }
  0x50   :  { %v671_v15 = vmax.f32 %v570_v11, %v639_v50  ;;  %v470_v20 = vmax.f32 %v369_v4, %v438_v13  ;;  %v269_v8 = vmax.f32 %v168_v10, %v237_v14  ;;  %v640_v24 = vadd.f32 %v1263_v49, %v905_v44  ;;  %v909_v4 = vld [vmem:[#allocation2 + $0xda] sm:$0xff] }
  0x51   :  { %v974_v12 = vmax.f32 %v873_v1, %v942_v0  ;;  %v439_v28 = vadd.f32 %v1252_v43, %v704_v62  ;;  %v169_v22 = vadd.f32 %v1234_v34, %v703_v27  ;;  %v238_v38 = vadd.f32 %v1239_v36, %v804_v41  ;;  %v707_v0 = vld [vmem:[#allocation2 + $0xd8] sm:$0xff] }
  0x52   :  { %v773_v29 = vmax.f32 %v671_v15, %v741_v9  ;;  %v571_v33 = vmax.f32 %v470_v20, %v539_v19  ;;  %v370_v37 = vmax.f32 %v269_v8, %v338_v16  ;;  %v742_v18 = vadd.f32 %v1269_v52, %v705_v21  ;;  %v808_v9 = vld [vmem:[#allocation2 + $0xd9] sm:$0xff] }
  0x53   :  { %1006 = vst.msk [vmem:[%s1814_s2 + $0x50] sm:$0xff] %vm11_vm0, %v974_v12  ;;  %v843_v39 = vadd.f32 %v1275_v56, %v806_v17  ;;  %v540_v23 = vadd.f32 %v1258_v47, %v805_v3  ;;  %v339_v42 = vadd.f32 %v1246_v40, %v905_v44  ;;  %v270_v41 = vmax.f32 %v169_v22, %v238_v38  ;;  %v708_v8 = vld [vmem:[#allocation2 + $0xe0] sm:$0xff] }
  0x54   :  { %v874_v27 = vmax.f32 %v773_v29, %v842_v6  ;;  %v672_v45 = vmax.f32 %v571_v33, %v640_v24  ;;  %v471_v31 = vmax.f32 %v370_v37, %v439_v28  ;;  %v944_v35 = vadd.f32 %v1281_v61, %v907_v26  ;;  %v809_v29 = vld [vmem:[#allocation2 + $0xe1] sm:$0xff] }
  0x55   :  { %v641_v54 = vadd.f32 %v1263_v49, %v1433_v5  ;;  %v440_v46 = vadd.f32 %v1252_v43, %v705_v21  ;;  %v170_v55 = vadd.f32 %v1234_v34, %v704_v62  ;;  %v371_v32 = vmax.f32 %v270_v41, %v339_v42  ;;  %v1495_v33 = vld [vmem:[#allocation2 + $0xe2] sm:$0xff] }
  0x56   :  { %v975_v48 = vmax.f32 %v874_v27, %v943_v57  ;;  %v774_v63 = vmax.f32 %v672_v45, %v742_v18  ;;  %v572_v44 = vmax.f32 %v471_v31, %v540_v23  ;;  %v743_v2 = vadd.f32 %v1269_v52, %v706_v51 }
  0x57   :  { %v844_v58 = vadd.f32 %v1275_v56, %v807_v25  ;;  %v945_v50 = vadd.f32 %v1281_v61, %v1462_v30  ;;  %v239_v53 = vadd.f32 %v1239_v36, %v805_v3  ;;  %v472_v7 = vmax.f32 %v371_v32, %v440_v46 }
  0x58   :  { %1007 = vst.msk [vmem:[%s1814_s2 + $0x58] sm:$0xff] %vm11_vm0, %v975_v48  ;;  %v875_v62 = vmax.f32 %v774_v63, %v843_v39  ;;  %v673_v60 = vmax.f32 %v572_v44, %v641_v54  ;;  %v541_v59 = vadd.f32 %v1258_v47, %v806_v17  ;;  %v642_v10 = vadd.f32 %v1263_v49, %v907_v26  ;;  %v810_v48 = vld [vmem:[#allocation2 + $0xf1] sm:$0xff] }
  0x59   :  { %v744_v11 = vadd.f32 %v1269_v52, %v707_v0  ;;  %v271_v13 = vmax.f32 %v170_v55, %v239_v53  ;;  %v340_v3 = vadd.f32 %v1246_v40, %v1433_v5  ;;  %v171_v57 = vadd.f32 %v1234_v34, %v705_v21  ;;  %v709_v55 = vld [vmem:[#allocation2 + $0xf0] sm:$0xff] }
  0x5a   :  { %v976_v14 = vmax.f32 %v875_v62, %v944_v35  ;;  %v775_v1 = vmax.f32 %v673_v60, %v743_v2  ;;  %v573_v6 = vmax.f32 %v472_v7, %v541_v59  ;;  %v845_v19 = vadd.f32 %v1275_v56, %v808_v9  ;;  %v911_v62 = vld [vmem:[#allocation2 + $0xf2] sm:$0xff] }
  0x5b   :  { %v372_v15 = vmax.f32 %v271_v13, %v340_v3  ;;  %v441_v20 = vadd.f32 %v1252_v43, %v706_v51  ;;  %v240_v16 = vadd.f32 %v1239_v36, %v806_v17  ;;  %v946_v24 = vadd.f32 %v1281_v61, %v909_v4 }
  0x5c   :  { %1008 = vst.msk [vmem:[%s1814_s2 + $0x60] sm:$0xff] %vm11_vm0, %v976_v14  ;;  %v876_v12 = vmax.f32 %v775_v1, %v844_v58  ;;  %v674_v5 = vmax.f32 %v573_v6, %v642_v10  ;;  %v542_v28 = vadd.f32 %v1258_v47, %v807_v25  ;;  %v643_v22 = vadd.f32 %v1263_v49, %v1462_v30  ;;  %v710_v14 = vld [vmem:[#allocation2 + $0xf8] sm:$0xff] }
  0x5d   :  { %v473_v21 = vmax.f32 %v372_v15, %v441_v20  ;;  %v272_v37 = vmax.f32 %v171_v57, %v240_v16  ;;  %v341_v17 = vadd.f32 %v1246_v40, %v907_v26  ;;  %v745_v39 = vadd.f32 %v1269_v52, %v708_v8  ;;  %v811_v1 = vld [vmem:[#allocation2 + $0xf9] sm:$0xff] }
  0x5e   :  { %v977_v38 = vmax.f32 %v876_v12, %v945_v50  ;;  %v776_v18 = vmax.f32 %v674_v5, %v744_v11  ;;  %v172_v23 = vadd.f32 %v1234_v34, %v706_v51  ;;  %v442_v45 = vadd.f32 %v1252_v43, %v707_v0  ;;  %v1524_v6 = vld [vmem:[#allocation2 + $0xfa] sm:$0xff] }
  0x5f   :  { %v574_v42 = vmax.f32 %v473_v21, %v542_v28  ;;  %v373_v27 = vmax.f32 %v272_v37, %v341_v17  ;;  %v241_v31 = vadd.f32 %v1239_v36, %v807_v25  ;;  %v846_v26 = vadd.f32 %v1275_v56, %v809_v29 }
  0x60   :  { %1009 = vst.msk [vmem:[%s1814_s2 + $0x68] sm:$0xff] %vm11_vm0, %v977_v38  ;;  %v877_v41 = vmax.f32 %v776_v18, %v845_v19  ;;  %v947_v35 = vadd.f32 %v1281_v61, %v1495_v33  ;;  %v543_v54 = vadd.f32 %v1258_v47, %v808_v9  ;;  %v342_v25 = vadd.f32 %v1246_v40, %v1462_v30 }
  0x61   :  { %v675_v51 = vmax.f32 %v574_v42, %v643_v22  ;;  %v474_v46 = vmax.f32 %v373_v27, %v442_v45  ;;  %v273_v63 = vmax.f32 %v172_v23, %v241_v31  ;;  %v644_v32 = vadd.f32 %v1263_v49, %v909_v4  ;;  %v913_v27 = vld [vmem:[#allocation2 + $0x10a] sm:$0xff] }
  0x62   :  { %v978_v44 = vmax.f32 %v877_v41, %v946_v24  ;;  %v443_v2 = vadd.f32 %v1252_v43, %v708_v8  ;;  %v173_v58 = vadd.f32 %v1234_v34, %v707_v0  ;;  %v242_v7 = vadd.f32 %v1239_v36, %v808_v9  ;;  %v711_v24 = vld [vmem:[#allocation2 + $0x108] sm:$0xff] }
  0x63   :  { %v777_v50 = vmax.f32 %v675_v51, %v745_v39  ;;  %v575_v53 = vmax.f32 %v474_v46, %v543_v54  ;;  %v374_v60 = vmax.f32 %v273_v63, %v342_v25  ;;  %v746_v30 = vadd.f32 %v1269_v52, %v709_v55  ;;  %v812_v39 = vld [vmem:[#allocation2 + $0x109] sm:$0xff] }
  0x64   :  { %1010 = vst.msk [vmem:[%s1814_s2 + $0x70] sm:$0xff] %vm11_vm0, %v978_v44  ;;  %v847_v59 = vadd.f32 %v1275_v56, %v810_v48  ;;  %v544_v10 = vadd.f32 %v1258_v47, %v809_v29  ;;  %v343_v11 = vadd.f32 %v1246_v40, %v909_v4  ;;  %v274_v9 = vmax.f32 %v173_v58, %v242_v7  ;;  %v712_v63 = vld [vmem:[#allocation2 + $0x110] sm:$0xff] }
  0x65   :  { %v878_v0 = vmax.f32 %v777_v50, %v846_v26  ;;  %v676_v13 = vmax.f32 %v575_v53, %v644_v32  ;;  %v475_v3 = vmax.f32 %v374_v60, %v443_v2  ;;  %v948_v57 = vadd.f32 %v1281_v61, %v911_v62  ;;  %v813_v50 = vld [vmem:[#allocation2 + $0x111] sm:$0xff] }
  0x66   :  { %v645_v19 = vadd.f32 %v1263_v49, %v1495_v33  ;;  %v444_v15 = vadd.f32 %v1252_v43, %v709_v55  ;;  %v174_v20 = vadd.f32 %v1234_v34, %v708_v8  ;;  %v375_v5 = vmax.f32 %v274_v9, %v343_v11  ;;  %v1557_v53 = vld [vmem:[#allocation2 + $0x112] sm:$0xff] }
  0x67   :  { %v979_v16 = vmax.f32 %v878_v0, %v947_v35  ;;  %v778_v12 = vmax.f32 %v676_v13, %v746_v30  ;;  %v576_v4 = vmax.f32 %v475_v3, %v544_v10  ;;  %v747_v28 = vadd.f32 %v1269_v52, %v710_v14 }
  0x68   :  { %v848_v21 = vadd.f32 %v1275_v56, %v811_v1  ;;  %v949_v22 = vadd.f32 %v1281_v61, %v1524_v6  ;;  %v243_v37 = vadd.f32 %v1239_v36, %v809_v29  ;;  %v476_v38 = vmax.f32 %v375_v5, %v444_v15 }
  0x69   :  { %1011 = vst.msk [vmem:[%s1814_s2 + $0x78] sm:$0xff] %vm11_vm0, %v979_v16  ;;  %v879_v8 = vmax.f32 %v778_v12, %v847_v59  ;;  %v677_v17 = vmax.f32 %v576_v4, %v645_v19  ;;  %v545_v18 = vadd.f32 %v1258_v47, %v810_v48  ;;  %v646_v23 = vadd.f32 %v1263_v49, %v911_v62  ;;  %v814_v16 = vld [vmem:[#allocation2 + $0x121] sm:$0xff] }
  0x6a   :  { %v748_v42 = vadd.f32 %v1269_v52, %v711_v24  ;;  %v275_v45 = vmax.f32 %v174_v20, %v243_v37  ;;  %v344_v29 = vadd.f32 %v1246_v40, %v1495_v33  ;;  %v175_v35 = vadd.f32 %v1234_v34, %v709_v55  ;;  %v713_v20 = vld [vmem:[#allocation2 + $0x120] sm:$0xff] }
  0x6b   :  { %v980_v31 = vmax.f32 %v879_v8, %v948_v57  ;;  %v779_v41 = vmax.f32 %v677_v17, %v747_v28  ;;  %v577_v26 = vmax.f32 %v476_v38, %v545_v18  ;;  %v849_v54 = vadd.f32 %v1275_v56, %v812_v39  ;;  %v915_v8 = vld [vmem:[#allocation2 + $0x122] sm:$0xff] }
  0x6c   :  { %v376_v51 = vmax.f32 %v275_v45, %v344_v29  ;;  %v445_v46 = vadd.f32 %v1252_v43, %v710_v14  ;;  %v244_v25 = vadd.f32 %v1239_v36, %v810_v48  ;;  %v950_v32 = vadd.f32 %v1281_v61, %v913_v27 }
  0x6d   :  { %1012 = vst.msk [vmem:[%s1814_s2 + $0x80] sm:$0xff] %vm11_vm0, %v980_v31  ;;  %v880_v44 = vmax.f32 %v779_v41, %v848_v21  ;;  %v678_v33 = vmax.f32 %v577_v26, %v646_v23  ;;  %v546_v2 = vadd.f32 %v1258_v47, %v811_v1  ;;  %v647_v58 = vadd.f32 %v1263_v49, %v1524_v6  ;;  %v714_v31 = vld [vmem:[#allocation2 + $0x128] sm:$0xff] }
  0x6e   :  { %v477_v55 = vmax.f32 %v376_v51, %v445_v46  ;;  %v276_v60 = vmax.f32 %v175_v35, %v244_v25  ;;  %v345_v48 = vadd.f32 %v1246_v40, %v911_v62  ;;  %v749_v59 = vadd.f32 %v1269_v52, %v712_v63  ;;  %v815_v41 = vld [vmem:[#allocation2 + $0x129] sm:$0xff] }
  0x6f   :  { %v981_v7 = vmax.f32 %v880_v44, %v949_v22  ;;  %v780_v30 = vmax.f32 %v678_v33, %v748_v42  ;;  %v176_v10 = vadd.f32 %v1234_v34, %v710_v14  ;;  %v446_v13 = vadd.f32 %v1252_v43, %v711_v24  ;;  %v1586_v26 = vld [vmem:[#allocation2 + $0x12a] sm:$0xff] }
  0x70   :  { %v578_v11 = vmax.f32 %v477_v55, %v546_v2  ;;  %v377_v0 = vmax.f32 %v276_v60, %v345_v48  ;;  %v245_v3 = vadd.f32 %v1239_v36, %v811_v1  ;;  %v850_v62 = vadd.f32 %v1275_v56, %v813_v50 }
  0x71   :  { %1013 = vst.msk [vmem:[%s1814_s2 + $0x88] sm:$0xff] %vm11_vm0, %v981_v7  ;;  %v881_v9 = vmax.f32 %v780_v30, %v849_v54  ;;  %v951_v57 = vadd.f32 %v1281_v61, %v1557_v53  ;;  %v547_v19 = vadd.f32 %v1258_v47, %v812_v39  ;;  %v346_v1 = vadd.f32 %v1246_v40, %v1524_v6 }
  0x72   :  { %v679_v14 = vmax.f32 %v578_v11, %v647_v58  ;;  %v478_v15 = vmax.f32 %v377_v0, %v446_v13  ;;  %v277_v12 = vmax.f32 %v176_v10, %v245_v3  ;;  %v648_v5 = vadd.f32 %v1263_v49, %v913_v27  ;;  %v1608_v0 = vld [vmem:[#allocation2 + $0x13a] sm:$0xff] }
  0x73   :  { %v982_v4 = vmax.f32 %v881_v9, %v950_v32  ;;  %v447_v28 = vadd.f32 %v1252_v43, %v712_v63  ;;  %v177_v21 = vadd.f32 %v1234_v34, %v711_v24  ;;  %v246_v38 = vadd.f32 %v1239_v36, %v812_v39  ;;  %v1593_v32 = vld [vmem:[#allocation2 + $0x138] sm:$0xff] }
  0x74   :  { %v781_v22 = vmax.f32 %v679_v14, %v749_v59  ;;  %v579_v37 = vmax.f32 %v478_v15, %v547_v19  ;;  %v378_v17 = vmax.f32 %v277_v12, %v346_v1  ;;  %v750_v6 = vadd.f32 %v1269_v52, %v713_v20  ;;  %v816_v59 = vld [vmem:[#allocation2 + $0x139] sm:$0xff] }
  0x75   :  { %1014 = vst.msk [vmem:[%s1814_s2 + $0x90] sm:$0xff] %vm11_vm0, %v982_v4  ;;  %v851_v18 = vadd.f32 %v1275_v56, %v814_v16  ;;  %v548_v23 = vadd.f32 %v1258_v47, %v813_v50  ;;  %v347_v42 = vadd.f32 %v1246_v40, %v913_v27  ;;  %v278_v39 = vmax.f32 %v177_v21, %v246_v38  ;;  %v1615_v12 = vld [vmem:[#allocation2 + $0x140] sm:$0xff] }
  0x76   :  { %v882_v24 = vmax.f32 %v781_v22, %v850_v62  ;;  %v680_v45 = vmax.f32 %v579_v37, %v648_v5  ;;  %v479_v29 = vmax.f32 %v378_v17, %v447_v28  ;;  %v952_v35 = vadd.f32 %v1281_v61, %v915_v8  ;;  %v1627_v21 = vld [vmem:[#allocation2 + $0x141] sm:$0xff] }
  0x77   :  { %v649_v54 = vadd.f32 %v1263_v49, %v1557_v53  ;;  %v448_v51 = vadd.f32 %v1252_v43, %v713_v20  ;;  %v178_v46 = vadd.f32 %v1234_v34, %v712_v63  ;;  %v379_v33 = vmax.f32 %v278_v39, %v347_v42  ;;  %v1629_v22 = vld [vmem:[#allocation2 + $0x142] sm:$0xff]  ;;  %v818_v39 = vld [vmem:[#allocation2 + $0x151] sm:$0xff] }
  0x78   :  { %v983_v25 = vmax.f32 %v882_v24, %v951_v57  ;;  %v782_v44 = vmax.f32 %v680_v45, %v750_v6  ;;  %v580_v27 = vmax.f32 %v479_v29, %v548_v23  ;;  %v751_v2 = vadd.f32 %v1269_v52, %v714_v31 }
  0x79   :  { %v852_v55 = vadd.f32 %v1275_v56, %v815_v41  ;;  %v953_v58 = vadd.f32 %v1281_v61, %v1586_v26  ;;  %v247_v60 = vadd.f32 %v1239_v36, %v813_v50  ;;  %v480_v7 = vmax.f32 %v379_v33, %v448_v51  ;;  %v1672_v51 = vld [vmem:[%s1813_s1 + $0x5] ss:$0 sm:$0xff] }
  0x7a   :  { %1015 = vst.msk [vmem:[%s1814_s2 + $0x98] sm:$0xff] %vm11_vm0, %v983_v25  ;;  %v883_v63 = vmax.f32 %v782_v44, %v851_v18  ;;  %v681_v48 = vmax.f32 %v580_v27, %v649_v54  ;;  %v549_v30 = vadd.f32 %v1258_v47, %v814_v16  ;;  %v650_v10 = vadd.f32 %v1263_v49, %v915_v8  ;;  %v1665_v54 = vld [vmem:[%s1813_s1 + $0x2] ss:$0 sm:$0xff]  ;;  %v1679_v25 = vld [vmem:[%s1813_s1 + $0x3] ss:$0 sm:$0xff] }
  0x7b   :  { %v752_v11 = vadd.f32 %v1269_v52, %v1593_v32  ;;  %v279_v13 = vmax.f32 %v178_v46, %v247_v60  ;;  %v348_v50 = vadd.f32 %v1246_v40, %v1557_v53  ;;  %v179_v57 = vadd.f32 %v1234_v34, %v713_v20  ;;  %v1693_v60 = vld [vmem:[%s1813_s1 + $0x6] ss:$0 sm:$0xff] }
  0x7c   :  { %v984_v3 = vmax.f32 %v883_v63, %v952_v35  ;;  %v783_v9 = vmax.f32 %v681_v48, %v751_v2  ;;  %v581_v62 = vmax.f32 %v480_v7, %v549_v30  ;;  %v853_v19 = vadd.f32 %v1275_v56, %v816_v59  ;;  %v919_v2 = vld [vmem:[#allocation2 + $0x152] sm:$0xff] }
  0x7d   :  { %v380_v14 = vmax.f32 %v279_v13, %v348_v50  ;;  %v449_v15 = vadd.f32 %v1252_v43, %v714_v31  ;;  %v248_v1 = vadd.f32 %v1239_v36, %v814_v16  ;;  %v954_v5 = vadd.f32 %v1281_v61, %v1608_v0  ;;  %v718_v13 = vld [vmem:[#allocation2 + $0x158] sm:$0xff] }
  0x7e   :  { %1016 = vst.msk [vmem:[%s1814_s2 + $0xa0] sm:$0xff] %vm11_vm0, %v984_v3  ;;  %v884_v53 = vmax.f32 %v783_v9, %v852_v55  ;;  %v682_v4 = vmax.f32 %v581_v62, %v650_v10  ;;  %v550_v34 = vadd.f32 %v1258_v47, %v815_v41  ;;  %v651_v28 = vadd.f32 %v1263_v49, %v1586_v26  ;;  %v1637_v47 = vld [vmem:[%s1813_s1] ss:$0 sm:$0xff]  ;;  %v1711_v62 = vld [vmem:[%s1813_s1 + $0x8] ss:$0 sm:$0xff] }
  0x7f   :  { %v481_v20 = vmax.f32 %v380_v14, %v449_v15  ;;  %v280_v36 = vmax.f32 %v179_v57, %v248_v1  ;;  %v349_v16 = vadd.f32 %v1246_v40, %v915_v8  ;;  %v753_v38 = vadd.f32 %v1269_v52, %v1615_v12  ;;  %v1645_v40 = vld [vmem:[%s1813_s1 + $0x1] ss:$0 sm:$0xff]  ;;  %v819_v50 = vld [vmem:[#allocation2 + $0x159] sm:$0xff] }
  0x80   :  { %v985_v37 = vmax.f32 %v884_v53, %v953_v58  ;;  %v784_v17 = vmax.f32 %v682_v4, %v752_v11  ;;  %v180_v6 = vadd.f32 %v1637_v47, %v714_v31  ;;  %v450_v23 = vadd.f32 %v1252_v43, %v1593_v32  ;;  %v1659_v43 = vld [vmem:[%s1813_s1 + $0x4] ss:$0 sm:$0xff]  ;;  %v1706_v3 = vld [vmem:[#allocation2 + $0x15a] sm:$0xff] }
  0x81   :  { %v582_v49 = vmax.f32 %v481_v20, %v550_v34  ;;  %v381_v18 = vmax.f32 %v280_v36, %v349_v16  ;;  %v249_v8 = vadd.f32 %v1645_v40, %v815_v41  ;;  %v854_v42 = vadd.f32 %v1275_v56, %v1627_v21  ;;  %v717_v41 = vld [vmem:[#allocation2 + $0x150] sm:$0xff] }
  0x82   :  { %1017 = vst.msk [vmem:[%s1814_s2 + $0xa8] sm:$0xff] %vm11_vm0, %v985_v37  ;;  %v885_v52 = vmax.f32 %v784_v17, %v853_v19  ;;  %v955_v24 = vadd.f32 %v1281_v61, %v1629_v22  ;;  %v551_v45 = vadd.f32 %v1659_v43, %v816_v59  ;;  %v350_v56 = vadd.f32 %v1665_v54, %v1586_v26 }
  0x83   :  { %v683_v29 = vmax.f32 %v582_v49, %v651_v28  ;;  %v482_v31 = vmax.f32 %v381_v18, %v450_v23  ;;  %v281_v35 = vmax.f32 %v180_v6, %v249_v8  ;;  %v652_v46 = vadd.f32 %v1672_v51, %v1608_v0  ;;  %v921_v18 = vld [vmem:[#allocation2 + $0x16a] sm:$0xff] }
  0x84   :  { %v986_v61 = vmax.f32 %v885_v52, %v954_v5  ;;  %v451_v44 = vadd.f32 %v1679_v25, %v1615_v12  ;;  %v181_v26 = vadd.f32 %v1637_v47, %v1593_v32  ;;  %v250_v58 = vadd.f32 %v1645_v40, %v816_v59  ;;  %v1699_v32 = vld [vmem:[%s1813_s1 + $0x7] ss:$0 sm:$0xff]  ;;  %v719_v5 = vld [vmem:[#allocation2 + $0x168] sm:$0xff] }
  0x85   :  { %v785_v27 = vmax.f32 %v683_v29, %v753_v38  ;;  %v583_v33 = vmax.f32 %v482_v31, %v551_v45  ;;  %v382_v55 = vmax.f32 %v281_v35, %v350_v56  ;;  %v754_v63 = vadd.f32 %v1693_v60, %v717_v41  ;;  %v820_v38 = vld [vmem:[#allocation2 + $0x169] sm:$0xff] }
  0x86   :  { %1018 = vst.msk [vmem:[%s1814_s2 + $0xb0] sm:$0xff] %vm11_vm0, %v986_v61  ;;  %v855_v48 = vadd.f32 %v1699_v32, %v818_v39  ;;  %v552_v7 = vadd.f32 %v1659_v43, %v1627_v21  ;;  %v351_v30 = vadd.f32 %v1665_v54, %v1608_v0  ;;  %v282_v9 = vmax.f32 %v181_v26, %v250_v58  ;;  %v720_v35 = vld [vmem:[#allocation2 + $0x170] sm:$0xff] }
  0x87   :  { %v886_v59 = vmax.f32 %v785_v27, %v854_v42  ;;  %v684_v10 = vmax.f32 %v583_v33, %v652_v46  ;;  %v483_v11 = vmax.f32 %v382_v55, %v451_v44  ;;  %v956_v57 = vadd.f32 %v1711_v62, %v919_v2  ;;  %v821_v27 = vld [vmem:[#allocation2 + $0x171] sm:$0xff] }
  0x88   :  { %v653_v19 = vadd.f32 %v1672_v51, %v1629_v22  ;;  %v452_v0 = vadd.f32 %v1679_v25, %v717_v41  ;;  %v182_v14 = vadd.f32 %v1637_v47, %v1615_v12  ;;  %v383_v4 = vmax.f32 %v282_v9, %v351_v30  ;;  %v922_v33 = vld [vmem:[#allocation2 + $0x172] sm:$0xff] }
  0x89   :  { %v987_v15 = vmax.f32 %v886_v59, %v955_v24  ;;  %v786_v1 = vmax.f32 %v684_v10, %v754_v63  ;;  %v584_v53 = vmax.f32 %v483_v11, %v552_v7  ;;  %v755_v34 = vadd.f32 %v1693_v60, %v718_v13 }
  0x8a   :  { %v856_v20 = vadd.f32 %v1699_v32, %v819_v50  ;;  %v957_v28 = vadd.f32 %v1711_v62, %v1706_v3  ;;  %v251_v36 = vadd.f32 %v1645_v40, %v1627_v21  ;;  %v484_v37 = vmax.f32 %v383_v4, %v452_v0 }
  0x8b   :  { %1019 = vst.msk [vmem:[%s1814_s2 + $0xb8] sm:$0xff] %vm11_vm0, %v987_v15  ;;  %v887_v12 = vmax.f32 %v786_v1, %v855_v48  ;;  %v685_v16 = vmax.f32 %v584_v53, %v653_v19  ;;  %v553_v17 = vadd.f32 %v1659_v43, %v818_v39  ;;  %v654_v6 = vadd.f32 %v1672_v51, %v919_v2 }
  0x8c   :  { %v756_v49 = vadd.f32 %v1693_v60, %v719_v5  ;;  %v283_v23 = vmax.f32 %v182_v14, %v251_v36  ;;  %v352_v21 = vadd.f32 %v1665_v54, %v1629_v22  ;;  %v183_v24 = vadd.f32 %v1637_v47, %v717_v41  ;;  %v721_v14 = vld [vmem:[#allocation2 + $0x180] sm:$0xff] }
  0x8d   :  { %v988_v8 = vmax.f32 %v887_v12, %v956_v57  ;;  %v787_v52 = vmax.f32 %v685_v16, %v755_v34  ;;  %v585_v42 = vmax.f32 %v484_v37, %v553_v17  ;;  %v857_v45 = vadd.f32 %v1699_v32, %v820_v38  ;;  %v822_v36 = vld [vmem:[#allocation2 + $0x181] sm:$0xff] }
  0x8e   :  { %v384_v29 = vmax.f32 %v283_v23, %v352_v21  ;;  %v453_v31 = vadd.f32 %v1679_v25, %v718_v13  ;;  %v252_v56 = vadd.f32 %v1645_v40, %v818_v39  ;;  %v958_v46 = vadd.f32 %v1711_v62, %v921_v18  ;;  %v923_v23 = vld [vmem:[#allocation2 + $0x182] sm:$0xff] }
  0x8f   :  { %1020 = vst.msk [vmem:[%s1814_s2 + $0xc0] sm:$0xff] %vm11_vm0, %v988_v8  ;;  %v888_v61 = vmax.f32 %v787_v52, %v856_v20  ;;  %v686_v22 = vmax.f32 %v585_v42, %v654_v6  ;;  %v554_v44 = vadd.f32 %v1659_v43, %v819_v50  ;;  %v655_v26 = vadd.f32 %v1672_v51, %v1706_v3  ;;  %v722_v8 = vld [vmem:[#allocation2 + $0x188] sm:$0xff] }
  0x90   :  { %v485_v41 = vmax.f32 %v384_v29, %v453_v31  ;;  %v284_v55 = vmax.f32 %v183_v24, %v252_v56  ;;  %v353_v39 = vadd.f32 %v1665_v54, %v919_v2  ;;  %v757_v48 = vadd.f32 %v1693_v60, %v720_v35  ;;  %v823_v52 = vld [vmem:[#allocation2 + $0x189] sm:$0xff] }
  0x91   :  { %v989_v58 = vmax.f32 %v888_v61, %v957_v28  ;;  %v788_v63 = vmax.f32 %v686_v22, %v756_v49  ;;  %v184_v7 = vadd.f32 %v1637_v47, %v718_v13  ;;  %v454_v10 = vadd.f32 %v1679_v25, %v719_v5 }
  0x92   :  { %v586_v30 = vmax.f32 %v485_v41, %v554_v44  ;;  %v385_v59 = vmax.f32 %v284_v55, %v353_v39  ;;  %v253_v11 = vadd.f32 %v1645_v40, %v819_v50  ;;  %v858_v2 = vadd.f32 %v1699_v32, %v821_v27  ;;  %v723_v44 = vld [vmem:[#allocation2 + $0x198] sm:$0xff]  ;;  %v924_v39 = vld [vmem:[#allocation2 + $0x18a] sm:$0xff] }
  0x93   :  { %1021 = vst.msk [vmem:[%s1814_s2 + $0xc8] sm:$0xff] %vm11_vm0, %v989_v58  ;;  %v889_v9 = vmax.f32 %v788_v63, %v857_v45  ;;  %v959_v57 = vadd.f32 %v1711_v62, %v922_v33  ;;  %v555_v19 = vadd.f32 %v1659_v43, %v820_v38  ;;  %v354_v1 = vadd.f32 %v1665_v54, %v1706_v3 }
  0x94   :  { %v687_v0 = vmax.f32 %v586_v30, %v655_v26  ;;  %v486_v13 = vmax.f32 %v385_v59, %v454_v10  ;;  %v285_v15 = vmax.f32 %v184_v7, %v253_v11  ;;  %v656_v53 = vadd.f32 %v1672_v51, %v921_v18  ;;  %v824_v10 = vld [vmem:[#allocation2 + $0x199] sm:$0xff] }
  0x95   :  { %v990_v50 = vmax.f32 %v889_v9, %v958_v46  ;;  %v455_v4 = vadd.f32 %v1679_v25, %v720_v35  ;;  %v185_v34 = vadd.f32 %v1637_v47, %v719_v5  ;;  %v254_v16 = vadd.f32 %v1645_v40, %v820_v38 }
  0x96   :  { %v789_v20 = vmax.f32 %v687_v0, %v757_v48  ;;  %v587_v28 = vmax.f32 %v486_v13, %v555_v19  ;;  %v386_v12 = vmax.f32 %v285_v15, %v354_v1  ;;  %v758_v3 = vadd.f32 %v1693_v60, %v721_v14  ;;  %v724_v19 = vld [vmem:[#allocation2 + $0x1a0] sm:$0xff] }
  0x97   :  { %1022 = vst.msk [vmem:[%s1814_s2 + $0xd0] sm:$0xff] %vm11_vm0, %v990_v50  ;;  %v556_v37 = vadd.f32 %v1659_v43, %v821_v27  ;;  %v355_v17 = vadd.f32 %v1665_v54, %v921_v18  ;;  %v456_v6 = vadd.f32 %v1679_v25, %v721_v14  ;;  %v286_v38 = vmax.f32 %v185_v34, %v254_v16  ;;  %v825_v34 = vld [vmem:[#allocation2 + $0x1a1] sm:$0xff] }
  0x98   :  { %v890_v5 = vmax.f32 %v789_v20, %v858_v2  ;;  %v688_v49 = vmax.f32 %v587_v28, %v656_v53  ;;  %v487_v21 = vmax.f32 %v386_v12, %v455_v4  ;;  %v859_v42 = vadd.f32 %v1699_v32, %v822_v36  ;;  %v926_v28 = vld [vmem:[#allocation2 + $0x1a2] sm:$0xff] }
  0x99   :  { %v657_v24 = vadd.f32 %v1672_v51, %v922_v33  ;;  %v186_v45 = vadd.f32 %v1637_v47, %v720_v35  ;;  %v387_v61 = vmax.f32 %v286_v38, %v355_v17  ;;  %v960_v18 = vadd.f32 %v1711_v62, %v923_v23 }
  0x9a   :  { %v991_v29 = vmax.f32 %v890_v5, %v959_v57  ;;  %v790_v31 = vmax.f32 %v688_v49, %v758_v3  ;;  %v588_v56 = vmax.f32 %v487_v21, %v556_v37  ;;  %v759_v22 = vadd.f32 %v1693_v60, %v722_v8 }
  0x9b   :  { %v860_v46 = vadd.f32 %v1699_v32, %v823_v52  ;;  %v255_v41 = vadd.f32 %v1645_v40, %v821_v27  ;;  %v488_v35 = vmax.f32 %v387_v61, %v456_v6  ;;  %v557_v55 = vadd.f32 %v1659_v43, %v822_v36 }
  0x9c   :  { %1023 = vst.msk [vmem:[%s1814_s2 + $0xd8] sm:$0xff] %vm11_vm0, %v991_v29  ;;  %v891_v26 = vmax.f32 %v790_v31, %v859_v42  ;;  %v689_v47 = vmax.f32 %v588_v56, %v657_v24  ;;  %v658_v58 = vadd.f32 %v1672_v51, %v923_v23  ;;  %v356_v48 = vadd.f32 %v1665_v54, %v922_v33  ;;  %v925_v54 = vld [vmem:[#allocation2 + $0x19a] sm:$0xff] }
  0x9d   :  { %v287_v63 = vmax.f32 %v186_v45, %v255_v41  ;;  %v457_v7 = vadd.f32 %v1679_v25, %v722_v8  ;;  %v589_v27 = vmax.f32 %v488_v35, %v557_v55  ;;  %v760_v59 = vadd.f32 %v1693_v60, %v723_v44 }
  0x9e   :  { %v992_v30 = vmax.f32 %v891_v26, %v960_v18  ;;  %v791_v40 = vmax.f32 %v689_v47, %v759_v22  ;;  %v961_v2 = vadd.f32 %v1711_v62, %v924_v39  ;;  %v558_v25 = vadd.f32 %v1659_v43, %v823_v52 }
  0x9f   :  { %v388_v11 = vmax.f32 %v287_v63, %v356_v48  ;;  %v690_v57 = vmax.f32 %v589_v27, %v658_v58  ;;  %v861_v14 = vadd.f32 %v1699_v32, %v824_v10  ;;  %v659_v1 = vadd.f32 %v1672_v51, %v924_v39 }
  0xa0   :  { %1024 = vst.msk [vmem:[%s1814_s2 + $0xe0] sm:$0xff] %vm11_vm0, %v992_v30  ;;  %v892_v9 = vmax.f32 %v791_v40, %v860_v46  ;;  %v761_v50 = vadd.f32 %v1693_v60, %v724_v19  ;;  %v962_v4 = vadd.f32 %v1711_v62, %v925_v54  ;;  %v862_v12 = vadd.f32 %v1699_v32, %v825_v34 }
  0xa1   :  { %v489_v33 = vmax.f32 %v388_v11, %v457_v7  ;;  %v792_v13 = vmax.f32 %v690_v57, %v760_v59  ;;  %v963_v60 = vadd.f32 %v1711_v62, %v926_v28 }
  0xa2   :  { %v993_v0 = vmax.f32 %v892_v9, %v961_v2 }
  0xa3   :  { %v590_v15 = vmax.f32 %v489_v33, %v558_v25  ;;  %v893_v53 = vmax.f32 %v792_v13, %v861_v14 }
  0xa4   :  { %1025 = vst.msk [vmem:[%s1814_s2 + $0xe8] sm:$0xff] %vm11_vm0, %v993_v0 }
  0xa5   :  { %v691_v20 = vmax.f32 %v590_v15, %v659_v1  ;;  %v994_v43 = vmax.f32 %v893_v53, %v962_v4 }
  0xa7   :  { %v793_v36 = vmax.f32 %v691_v20, %v761_v50  ;;  %1026 = vst.msk [vmem:[%s1814_s2 + $0xf0] sm:$0xff] %vm11_vm0, %v994_v43 }
  0xa9   :  { %v894_v51 = vmax.f32 %v793_v36, %v862_v12 }
  0xab   :  { %v995_v16 = vmax.f32 %v894_v51, %v963_v60 }
  0xad   :  { %1027 = vst.msk [vmem:[%s1814_s2 + $0xf8] sm:$0xff] %vm11_vm0, %v995_v16 }

</bundles_post_ra>
